<compile_context>
chip_gen: v7x
topology: tpu7x:2x2x1
jax: 0.10.0
libtpu: 0.0.40
codegen_flags: <defaults>
</compile_context>

<pallas_src>
import functools
import math

import jax
import jax.numpy as jnp
from jax.experimental import pallas as pl
from jax.experimental.pallas import tpu as pltpu

# ---- small synthetic BERT config ----
VOCAB = 100
HIDDEN = 32
NUM_LAYERS = 2
NUM_HEADS = 2
HEAD_DIM = HIDDEN // NUM_HEADS
INTERMEDIATE = 64
MAX_POS = 16
TYPE_VOCAB = 2
LN_EPS = 1e-12


# ------------------------------ in-kernel math ------------------------------

def _gelu(x):
    # TODO(synk): HF BERT default is exact-erf GELU; tanh approximation keeps
    # to guaranteed Mosaic elementwise lowerings (EUP tanh).
    c = math.sqrt(2.0 / math.pi)
    return 0.5 * x * (1.0 + jnp.tanh(c * (x + 0.044715 * x * x * x)))


def _layernorm(h, gamma, beta):
    mean = jnp.mean(h, axis=-1, keepdims=True)
    var = jnp.mean(jnp.square(h - mean), axis=-1, keepdims=True)
    return (h - mean) * jax.lax.rsqrt(var + LN_EPS) * gamma + beta


# --------------------- fused whole-encoder Pallas kernel ---------------------

def _encoder_kernel(x_ref, mask_ref, embg_ref, embb_ref,
                    wqkv_ref, bqkv_ref, wo_ref, bo_ref,
                    ln1g_ref, ln1b_ref, w1_ref, b1_ref, w2_ref, b2_ref,
                    ln2g_ref, ln2b_ref,
                    o_ref,
                    act_ref, qkv_ref, h1_ref,
                    *, batch, seq, num_heads, head_dim):
    layer = pl.program_id(0)
    last = pl.num_programs(0) - 1
    hidden = num_heads * head_dim

    # Step-0 prologue: embedding LayerNorm into the layer-resident activation.
    @pl.when(layer == 0)
    def _():
        act_ref[...] = _layernorm(x_ref[...], embg_ref[...], embb_ref[...])

    x = act_ref[...]                                             # (B*L, H)

    # Fused QKV projection (one MXU matmul against the (H, 3H) weight).
    # The 1/sqrt(Dh) scale is pre-folded into the Q columns/bias.
    qkv_ref[...] = (jnp.dot(x, wqkv_ref[...], preferred_element_type=jnp.float32)
                    + bqkv_ref[...])                             # (B*L, 3H)

    # Mask bias computed once per step, hoisted out of the batch/head loops.
    bias = (1.0 - mask_ref[...]) * -10000.0                      # (B, L)

    # TODO(synk): replace the static (batch, head) unroll with grid axes /
    # lax.fori_loop for non-toy B*num_heads (vreg pressure + compile time).
    for b in range(batch):
        r0 = b * seq
        bias_b = bias[b:b + 1, :]                                # (1, L)
        attn_b = jnp.zeros((seq, hidden), jnp.float32)
        for hd in range(num_heads):
            c0 = hd * head_dim
            # Ref slices of the QKV scratch (no value-slicing of the matmul).
            q = qkv_ref[r0:r0 + seq, c0:c0 + head_dim]                         # (L, Dh)
            k = qkv_ref[r0:r0 + seq, hidden + c0:hidden + c0 + head_dim]       # (L, Dh)
            v = qkv_ref[r0:r0 + seq, 2 * hidden + c0:2 * hidden + c0 + head_dim]
            s = jax.lax.dot_general(q, k, (((1,), (1,)), ((), ())),
                                    preferred_element_type=jnp.float32)        # (L, L)
            s = s + bias_b
            s = s - jnp.max(s, axis=-1, keepdims=True)
            p = jnp.exp(s)
            # divide -> EUP reciprocal (frees the VALU slot)
            p = p * pl.reciprocal(jnp.sum(p, axis=-1, keepdims=True), approx=True)
            ctx = jnp.dot(p, v, preferred_element_type=jnp.float32)            # (L, Dh)
            # Per-head partial product straight into the output projection:
            # no lane-axis head concat.
            attn_b = attn_b + jnp.dot(ctx, wo_ref[c0:c0 + head_dim, :],
                                      preferred_element_type=jnp.float32)
        xb = x[r0:r0 + seq, :]                                   # sublane-aligned slice
        h1_ref[r0:r0 + seq, :] = _layernorm(attn_b + bo_ref[...] + xb,
                                            ln1g_ref[...], ln1b_ref[...])

    # Feed-forward (GELU) + residual + LayerNorm (fused epilogue), f32.
    h1 = h1_ref[...]
    inter = _gelu(jnp.dot(h1, w1_ref[...], preferred_element_type=jnp.float32)
                  + b1_ref[...])
    ffn = (jnp.dot(inter, w2_ref[...], preferred_element_type=jnp.float32)
           + b2_ref[...])
    out = _layernorm(ffn + h1, ln2g_ref[...], ln2b_ref[...])

    # Carry the activation in VMEM across layers; only the last layer writes
    # the output block back to HBM (single store for the whole encoder).
    @pl.when(layer < last)
    def _():
        act_ref[...] = out

    @pl.when(layer == last)
    def _():
        o_ref[...] = out


def bert_encoder(x_emb, mask, emb_g, emb_b, stacked, *, batch, seq):
    n, h = x_emb.shape
    inter = INTERMEDIATE

    def rep(shape):
        # Layer-invariant input: same block every step -> stays VMEM-resident.
        nd = len(shape)
        return pl.BlockSpec(shape, lambda l, _nd=nd: (0,) * _nd)

    def per_layer(*dims):
        # Layer-stacked input: leading layer dim squeezed, indexed by the grid.
        nd = len(dims)
        return pl.BlockSpec((None,) + dims, lambda l, _nd=nd: (l,) + (0,) * _nd)

    kern = functools.partial(_encoder_kernel, batch=batch, seq=seq,
                             num_heads=NUM_HEADS, head_dim=HEAD_DIM)
    return pl.pallas_call(
        kern,
        grid=(NUM_LAYERS,),
        out_shape=jax.ShapeDtypeStruct((n, h), jnp.float32),
        in_specs=[
            rep((n, h)),                       # pre-LN embeddings
            rep((batch, seq)),                 # compact attention mask
            rep((1, h)), rep((1, h)),          # embedding LN gamma / beta
            per_layer(h, 3 * h),               # wqkv (Q columns pre-scaled)
            per_layer(1, 3 * h),               # bqkv
            per_layer(h, h),                   # wo
            per_layer(1, h),                   # bo
            per_layer(1, h), per_layer(1, h),  # ln1 gamma / beta
            per_layer(h, inter),               # w1
            per_layer(1, inter),               # b1
            per_layer(inter, h),               # w2
            per_layer(1, h),                   # b2
            per_layer(1, h), per_layer(1, h),  # ln2 gamma / beta
        ],
        out_specs=pl.BlockSpec((n, h), lambda l: (0, 0)),
        scratch_shapes=[
            pltpu.VMEM((n, h), jnp.float32),       # layer-resident activation
            pltpu.VMEM((n, 3 * h), jnp.float32),   # QKV staging (ref-sliced per head)
            pltpu.VMEM((n, h), jnp.float32),       # post-attention hidden
        ],
        compiler_params=pltpu.CompilerParams(
            # Layer axis carries state (sequential); a parallel row/head axis
            # for v7x's 2 TCs is part of the real-shape TODO above.
            dimension_semantics=("arbitrary",)),
    )(x_emb, mask, emb_g.reshape(1, h), emb_b.reshape(1, h),
      stacked["wqkv"], stacked["bqkv"], stacked["wo"], stacked["bo"],
      stacked["ln1_g"], stacked["ln1_b"], stacked["w1"], stacked["b1"],
      stacked["w2"], stacked["b2"], stacked["ln2_g"], stacked["ln2_b"])


# -------------------------- parameters (synthetic) --------------------------

def init_params(key):
    keys = iter(jax.random.split(key, 3 + 4 * NUM_LAYERS))

    def nrm(shape):
        return 0.02 * jax.random.normal(next(keys), shape, jnp.float32)

    params = {
        "word_emb": nrm((VOCAB, HIDDEN)),
        "pos_emb": nrm((MAX_POS, HIDDEN)),
        "type_emb": nrm((TYPE_VOCAB, HIDDEN)),
        "emb_ln_g": jnp.ones((HIDDEN,), jnp.float32),
        "emb_ln_b": jnp.zeros((HIDDEN,), jnp.float32),
        "layers": [],
    }
    for _ in range(NUM_LAYERS):
        params["layers"].append({
            # wq/wk/wv concatenated along the output dim -> one MXU matmul.
            "wqkv": nrm((HIDDEN, 3 * HIDDEN)),
            "bqkv": jnp.zeros((3 * HIDDEN,), jnp.float32),
            "wo": nrm((HIDDEN, HIDDEN)), "bo": jnp.zeros((HIDDEN,), jnp.float32),
            "ln1_g": jnp.ones((HIDDEN,), jnp.float32),
            "ln1_b": jnp.zeros((HIDDEN,), jnp.float32),
            "w1": nrm((HIDDEN, INTERMEDIATE)),
            "b1": jnp.zeros((INTERMEDIATE,), jnp.float32),
            "w2": nrm((INTERMEDIATE, HIDDEN)),
            "b2": jnp.zeros((HIDDEN,), jnp.float32),
            "ln2_g": jnp.ones((HIDDEN,), jnp.float32),
            "ln2_b": jnp.zeros((HIDDEN,), jnp.float32),
        })
    return params


def _stack_layers(params):
    """Stack per-layer params along a leading layer dim and fold the attention
    scale into the Q weights/bias (one-time parameter transform)."""
    def stk(name, reshape=None):
        a = jnp.stack([lp[name] for lp in params["layers"]])
        return a if reshape is None else a.reshape((NUM_LAYERS,) + reshape)

    scale = 1.0 / math.sqrt(HEAD_DIM)
    wqkv = stk("wqkv")
    bqkv = stk("bqkv", (1, 3 * HIDDEN))
    wqkv = wqkv.at[:, :, :HIDDEN].multiply(scale)     # scale Q columns
    bqkv = bqkv.at[:, :, :HIDDEN].multiply(scale)     # scale Q bias
    return {
        "wqkv": wqkv, "bqkv": bqkv,
        "wo": stk("wo"), "bo": stk("bo", (1, HIDDEN)),
        "ln1_g": stk("ln1_g", (1, HIDDEN)), "ln1_b": stk("ln1_b", (1, HIDDEN)),
        "w1": stk("w1"), "b1": stk("b1", (1, INTERMEDIATE)),
        "w2": stk("w2"), "b2": stk("b2", (1, HIDDEN)),
        "ln2_g": stk("ln2_g", (1, HIDDEN)), "ln2_b": stk("ln2_b", (1, HIDDEN)),
    }


# ------------------------------- forward pass -------------------------------

def bert_text_encoder_forward(params, text, use_finetune=False):
    """text: (B, 3, L); rows = input_ids, input_mask, segment_ids.

    Returns last hidden states (B, L, HIDDEN).  `use_finetune` only toggles
    gradient tracking in the PyTorch reference; forward values are identical.
    """
    input_ids = text[:, 0, :].astype(jnp.int32)
    input_mask = text[:, 1, :].astype(jnp.float32)
    segment_ids = text[:, 2, :].astype(jnp.int32)
    batch, seq = input_ids.shape

    # Embedding gathers are data-dependent -> left to XLA.
    pos_ids = jnp.arange(seq, dtype=jnp.int32)
    emb = (jnp.take(params["word_emb"], input_ids, axis=0)
           + jnp.take(params["pos_emb"], pos_ids, axis=0)[None, :, :]
           + jnp.take(params["type_emb"], segment_ids, axis=0))

    stacked = _stack_layers(params)
    out = bert_encoder(emb.reshape(batch * seq, HIDDEN).astype(jnp.float32),
                       input_mask,
                       params["emb_ln_g"], params["emb_ln_b"],
                       stacked, batch=batch, seq=seq)
    return out.reshape(batch, seq, HIDDEN)


# ----------------------------------- main -----------------------------------

if __name__ == "__main__":
    key = jax.random.PRNGKey(0)
    pkey, ikey = jax.random.split(key, 2)
    params = init_params(pkey)

    B, L = 2, 8
    input_ids = jax.random.randint(ikey, (B, L), 0, VOCAB).astype(jnp.float32)
    input_mask = jnp.concatenate(
        [jnp.ones((B, L - 2), jnp.float32), jnp.zeros((B, 2), jnp.float32)], axis=1)
    segment_ids = jnp.concatenate(
        [jnp.zeros((B, L // 2), jnp.float32), jnp.ones((B, L // 2), jnp.float32)], axis=1)
    text = jnp.stack([input_ids, input_mask, segment_ids], axis=1)  # (B, 3, L)

    fwd = jax.jit(lambda t: bert_text_encoder_forward(params, t, use_finetune=False))
    out = jax.block_until_ready(fwd(text))
    assert out.shape == (B, L, HIDDEN), out.shape
    assert out.dtype == jnp.float32
    assert bool(jnp.all(jnp.isfinite(out)))
    print("KERNEL_OK")
</pallas_src>

<mosaic_0001>
module attributes {stable_mosaic.version = 11 : i64} {
  func.func @_encoder_kernel(%arg0: i32, %arg1: memref<16x32xf32, #tpu.memory_space<vmem>>, %arg2: memref<2x8xf32, #tpu.memory_space<vmem>>, %arg3: memref<1x32xf32, #tpu.memory_space<vmem>>, %arg4: memref<1x32xf32, #tpu.memory_space<vmem>>, %arg5: memref<1x32x96xf32, #tpu.memory_space<vmem>>, %arg6: memref<1x1x96xf32, #tpu.memory_space<vmem>>, %arg7: memref<1x32x32xf32, #tpu.memory_space<vmem>>, %arg8: memref<1x1x32xf32, #tpu.memory_space<vmem>>, %arg9: memref<1x1x32xf32, #tpu.memory_space<vmem>>, %arg10: memref<1x1x32xf32, #tpu.memory_space<vmem>>, %arg11: memref<1x32x64xf32, #tpu.memory_space<vmem>>, %arg12: memref<1x1x64xf32, #tpu.memory_space<vmem>>, %arg13: memref<1x64x32xf32, #tpu.memory_space<vmem>>, %arg14: memref<1x1x32xf32, #tpu.memory_space<vmem>>, %arg15: memref<1x1x32xf32, #tpu.memory_space<vmem>>, %arg16: memref<1x1x32xf32, #tpu.memory_space<vmem>>, %arg17: memref<16x32xf32, #tpu.memory_space<vmem>>, %arg18: memref<16x32xf32, #tpu.memory_space<vmem>>, %arg19: memref<16x96xf32, #tpu.memory_space<vmem>>, %arg20: memref<16x32xf32, #tpu.memory_space<vmem>>) attributes {dimension_semantics = [#tpu.dimension_semantics<arbitrary>], iteration_bounds = array<i64: 2>, scalar_prefetch = 0 : i64, scratch_operands = 3 : i64, tpu.core_type = #tpu.core_type<tc>, window_params = [{pipeline_mode = #tpu.pipeline_mode<synchronous>, transform_indices = @transform_0, window_bounds = array<i64: 16, 32>}, {pipeline_mode = #tpu.pipeline_mode<synchronous>, transform_indices = @transform_1, window_bounds = array<i64: 2, 8>}, {pipeline_mode = #tpu.pipeline_mode<synchronous>, transform_indices = @transform_2, window_bounds = array<i64: 1, 32>}, {pipeline_mode = #tpu.pipeline_mode<synchronous>, transform_indices = @transform_3, window_bounds = array<i64: 1, 32>}, {transform_indices = @transform_4, window_bounds = array<i64: 1, 32, 96>}, {transform_indices = @transform_5, window_bounds = array<i64: 1, 1, 96>}, {transform_indices = @transform_6, window_bounds = array<i64: 1, 32, 32>}, {transform_indices = @transform_7, window_bounds = array<i64: 1, 1, 32>}, {transform_indices = @transform_8, window_bounds = array<i64: 1, 1, 32>}, {transform_indices = @transform_9, window_bounds = array<i64: 1, 1, 32>}, {transform_indices = @transform_10, window_bounds = array<i64: 1, 32, 64>}, {transform_indices = @transform_11, window_bounds = array<i64: 1, 1, 64>}, {transform_indices = @transform_12, window_bounds = array<i64: 1, 64, 32>}, {transform_indices = @transform_13, window_bounds = array<i64: 1, 1, 32>}, {transform_indices = @transform_14, window_bounds = array<i64: 1, 1, 32>}, {transform_indices = @transform_15, window_bounds = array<i64: 1, 1, 32>}, {pipeline_mode = #tpu.pipeline_mode<synchronous>, transform_indices = @transform_16, window_bounds = array<i64: 16, 32>}]} {
    %c0_i32 = arith.constant 0 : i32
    %0 = arith.cmpi eq, %arg0, %c0_i32 : i32
    %1 = arith.extui %0 : i1 to i32
    %c0_i32_0 = arith.constant 0 : i32
    %2 = arith.cmpi ne, %1, %c0_i32_0 : i32
    scf.if %2 {
      %c0_132 = arith.constant 0 : index
      %c0_133 = arith.constant 0 : index
      %232 = vector.load %arg1[%c0_132, %c0_133] : memref<16x32xf32, #tpu.memory_space<vmem>>, vector<16x32xf32>
      %c0_134 = arith.constant 0 : index
      %c0_135 = arith.constant 0 : index
      %233 = vector.load %arg3[%c0_134, %c0_135] : memref<1x32xf32, #tpu.memory_space<vmem>>, vector<1x32xf32>
      %c0_136 = arith.constant 0 : index
      %c0_137 = arith.constant 0 : index
      %234 = vector.load %arg4[%c0_136, %c0_137] : memref<1x32xf32, #tpu.memory_space<vmem>>, vector<1x32xf32>
      %cst_138 = arith.constant dense<0.000000e+00> : vector<16xf32>
      %235 = vector.multi_reduction <add>, %232, %cst_138 [1] : vector<16x32xf32> to vector<16xf32>
      %236 = vector.shape_cast %235 : vector<16xf32> to vector<16x1xf32>
      %cst_139 = arith.constant 3.200000e+01 : f32
      %237 = vector.broadcast %cst_139 : f32 to vector<16x1xf32>
      %238 = arith.divf %236, %237 : vector<16x1xf32>
      %239 = vector.broadcast %238 : vector<16x1xf32> to vector<16x32xf32>
      %240 = arith.subf %232, %239 : vector<16x32xf32>
      %241 = arith.mulf %240, %240 : vector<16x32xf32>
      %cst_140 = arith.constant dense<0.000000e+00> : vector<16xf32>
      %242 = vector.multi_reduction <add>, %241, %cst_140 [1] : vector<16x32xf32> to vector<16xf32>
      %243 = vector.shape_cast %242 : vector<16xf32> to vector<16x1xf32>
      %cst_141 = arith.constant 3.200000e+01 : f32
      %244 = vector.broadcast %cst_141 : f32 to vector<16x1xf32>
      %245 = arith.divf %243, %244 : vector<16x1xf32>
      %246 = vector.broadcast %238 : vector<16x1xf32> to vector<16x32xf32>
      %247 = arith.subf %232, %246 : vector<16x32xf32>
      %cst_142 = arith.constant 9.99999996E-13 : f32
      %248 = vector.broadcast %cst_142 : f32 to vector<16x1xf32>
      %249 = arith.addf %245, %248 : vector<16x1xf32>
      %250 = math.rsqrt %249 : vector<16x1xf32>
      %251 = vector.broadcast %250 : vector<16x1xf32> to vector<16x32xf32>
      %252 = arith.mulf %247, %251 : vector<16x32xf32>
      %253 = vector.broadcast %233 : vector<1x32xf32> to vector<16x32xf32>
      %254 = arith.mulf %252, %253 : vector<16x32xf32>
      %255 = vector.broadcast %234 : vector<1x32xf32> to vector<16x32xf32>
      %256 = arith.addf %254, %255 : vector<16x32xf32>
      %c0_143 = arith.constant 0 : index
      %c0_144 = arith.constant 0 : index
      %257 = vector.load %arg18[%c0_143, %c0_144] : memref<16x32xf32, #tpu.memory_space<vmem>>, vector<16x32xf32>
      tpu.vector_store %arg18[%c0_143, %c0_144], %256 {strides = array<i32>} : memref<16x32xf32, #tpu.memory_space<vmem>>, vector<16x32xf32>,
    } else {
    }
    %c0 = arith.constant 0 : index
    %c0_1 = arith.constant 0 : index
    %3 = vector.load %arg18[%c0, %c0_1] : memref<16x32xf32, #tpu.memory_space<vmem>>, vector<16x32xf32>
    %c0_2 = arith.constant 0 : index
    %c0_3 = arith.constant 0 : index
    %c0_4 = arith.constant 0 : index
    %4 = vector.load %arg5[%c0_2, %c0_3, %c0_4] : memref<1x32x96xf32, #tpu.memory_space<vmem>>, vector<1x32x96xf32>
    %5 = vector.shape_cast %4 : vector<1x32x96xf32> to vector<32x96xf32>
    %cst = arith.constant dense<0.000000e+00> : vector<16x96xf32>
    %6 = tpu.matmul %3, %5, %cst {dimension_numbers = #tpu.dot_dimension_numbers<[1], [0], [0], [1], [0, 0, 1, 1], [], []>} : vector<16x32xf32>, vector<32x96xf32>, vector<16x96xf32> -> vector<16x96xf32>
    %c0_5 = arith.constant 0 : index
    %c0_6 = arith.constant 0 : index
    %c0_7 = arith.constant 0 : index
    %7 = vector.load %arg6[%c0_5, %c0_6, %c0_7] : memref<1x1x96xf32, #tpu.memory_space<vmem>>, vector<1x1x96xf32>
    %8 = vector.shape_cast %7 : vector<1x1x96xf32> to vector<1x96xf32>
    %9 = vector.broadcast %8 : vector<1x96xf32> to vector<16x96xf32>
    %10 = arith.addf %6, %9 : vector<16x96xf32>
    %c0_8 = arith.constant 0 : index
    %c0_9 = arith.constant 0 : index
    %11 = vector.load %arg19[%c0_8, %c0_9] : memref<16x96xf32, #tpu.memory_space<vmem>>, vector<16x96xf32>
    tpu.vector_store %arg19[%c0_8, %c0_9], %10 {strides = array<i32>} : memref<16x96xf32, #tpu.memory_space<vmem>>, vector<16x96xf32>,
    %c0_10 = arith.constant 0 : index
    %c0_11 = arith.constant 0 : index
    %12 = vector.load %arg2[%c0_10, %c0_11] : memref<2x8xf32, #tpu.memory_space<vmem>>, vector<2x8xf32>
    %cst_12 = arith.constant 1.000000e+00 : f32
    %13 = vector.broadcast %cst_12 : f32 to vector<2x8xf32>
    %14 = arith.subf %13, %12 : vector<2x8xf32>
    %cst_13 = arith.constant -1.000000e+04 : f32
    %15 = vector.broadcast %cst_13 : f32 to vector<2x8xf32>
    %16 = arith.mulf %14, %15 : vector<2x8xf32>
    %17 = vector.extract_strided_slice %16 {offsets = [0, 0], sizes = [1, 8], strides = [1, 1]} : vector<2x8xf32> to vector<1x8xf32>
    %cst_14 = arith.constant 0.000000e+00 : f32
    %18 = vector.broadcast %cst_14 : f32 to vector<8x32xf32>
    %c0_15 = arith.constant 0 : index
    %c0_16 = arith.constant 0 : index
    %19 = vector.load %arg19[%c0_15, %c0_16] : memref<16x96xf32, #tpu.memory_space<vmem>>, vector<8x16xf32>
    %c0_17 = arith.constant 0 : index
    %c32 = arith.constant 32 : index
    %20 = vector.load %arg19[%c0_17, %c32] : memref<16x96xf32, #tpu.memory_space<vmem>>, vector<8x16xf32>
    %c0_18 = arith.constant 0 : index
    %c64 = arith.constant 64 : index
    %21 = vector.load %arg19[%c0_18, %c64] : memref<16x96xf32, #tpu.memory_space<vmem>>, vector<8x16xf32>
    %cst_19 = arith.constant dense<0.000000e+00> : vector<8x8xf32>
    %22 = tpu.matmul %19, %20, %cst_19 {dimension_numbers = #tpu.dot_dimension_numbers<[1], [1], [0], [0], [0, 0, 1, 0], [], []>} : vector<8x16xf32>, vector<8x16xf32>, vector<8x8xf32> -> vector<8x8xf32>
    %23 = vector.broadcast %17 : vector<1x8xf32> to vector<8x8xf32>
    %24 = arith.addf %22, %23 : vector<8x8xf32>
    %cst_20 = arith.constant dense<0xFF800000> : vector<8xf32>
    %25 = vector.multi_reduction <maximumf>, %24, %cst_20 [1] : vector<8x8xf32> to vector<8xf32>
    %26 = vector.shape_cast %25 : vector<8xf32> to vector<8x1xf32>
    %27 = vector.broadcast %26 : vector<8x1xf32> to vector<8x8xf32>
    %28 = arith.subf %24, %27 : vector<8x8xf32>
    %29 = math.exp %28 : vector<8x8xf32>
    %cst_21 = arith.constant dense<0.000000e+00> : vector<8xf32>
    %30 = vector.multi_reduction <add>, %29, %cst_21 [1] : vector<8x8xf32> to vector<8xf32>
    %31 = vector.shape_cast %30 : vector<8xf32> to vector<8x1xf32>
    %32 = tpu.reciprocal %31 {approx = true} : vector<8x1xf32> -> vector<8x1xf32>
    %33 = vector.broadcast %32 : vector<8x1xf32> to vector<8x8xf32>
    %34 = arith.mulf %29, %33 : vector<8x8xf32>
    %cst_22 = arith.constant dense<0.000000e+00> : vector<8x16xf32>
    %35 = tpu.matmul %34, %21, %cst_22 {dimension_numbers = #tpu.dot_dimension_numbers<[1], [0], [0], [1], [0, 0, 1, 1], [], []>} : vector<8x8xf32>, vector<8x16xf32>, vector<8x16xf32> -> vector<8x16xf32>
    %c0_23 = arith.constant 0 : index
    %c0_24 = arith.constant 0 : index
    %c0_25 = arith.constant 0 : index
    %36 = vector.load %arg7[%c0_23, %c0_24, %c0_25] : memref<1x32x32xf32, #tpu.memory_space<vmem>>, vector<1x16x32xf32>
    %37 = vector.shape_cast %36 : vector<1x16x32xf32> to vector<16x32xf32>
    %cst_26 = arith.constant dense<0.000000e+00> : vector<8x32xf32>
    %38 = tpu.matmul %35, %37, %cst_26 {dimension_numbers = #tpu.dot_dimension_numbers<[1], [0], [0], [1], [0, 0, 1, 1], [], []>} : vector<8x16xf32>, vector<16x32xf32>, vector<8x32xf32> -> vector<8x32xf32>
    %39 = arith.addf %18, %38 : vector<8x32xf32>
    %c0_27 = arith.constant 0 : index
    %c16 = arith.constant 16 : index
    %40 = vector.load %arg19[%c0_27, %c16] : memref<16x96xf32, #tpu.memory_space<vmem>>, vector<8x16xf32>
    %c0_28 = arith.constant 0 : index
    %c48 = arith.constant 48 : index
    %41 = vector.load %arg19[%c0_28, %c48] : memref<16x96xf32, #tpu.memory_space<vmem>>, vector<8x16xf32>
    %c0_29 = arith.constant 0 : index
    %c80 = arith.constant 80 : index
    %42 = vector.load %arg19[%c0_29, %c80] : memref<16x96xf32, #tpu.memory_space<vmem>>, vector<8x16xf32>
    %cst_30 = arith.constant dense<0.000000e+00> : vector<8x8xf32>
    %43 = tpu.matmul %40, %41, %cst_30 {dimension_numbers = #tpu.dot_dimension_numbers<[1], [1], [0], [0], [0, 0, 1, 0], [], []>} : vector<8x16xf32>, vector<8x16xf32>, vector<8x8xf32> -> vector<8x8xf32>
    %44 = vector.broadcast %17 : vector<1x8xf32> to vector<8x8xf32>
    %45 = arith.addf %43, %44 : vector<8x8xf32>
    %cst_31 = arith.constant dense<0xFF800000> : vector<8xf32>
    %46 = vector.multi_reduction <maximumf>, %45, %cst_31 [1] : vector<8x8xf32> to vector<8xf32>
    %47 = vector.shape_cast %46 : vector<8xf32> to vector<8x1xf32>
    %48 = vector.broadcast %47 : vector<8x1xf32> to vector<8x8xf32>
    %49 = arith.subf %45, %48 : vector<8x8xf32>
    %50 = math.exp %49 : vector<8x8xf32>
    %cst_32 = arith.constant dense<0.000000e+00> : vector<8xf32>
    %51 = vector.multi_reduction <add>, %50, %cst_32 [1] : vector<8x8xf32> to vector<8xf32>
    %52 = vector.shape_cast %51 : vector<8xf32> to vector<8x1xf32>
    %53 = tpu.reciprocal %52 {approx = true} : vector<8x1xf32> -> vector<8x1xf32>
    %54 = vector.broadcast %53 : vector<8x1xf32> to vector<8x8xf32>
    %55 = arith.mulf %50, %54 : vector<8x8xf32>
    %cst_33 = arith.constant dense<0.000000e+00> : vector<8x16xf32>
    %56 = tpu.matmul %55, %42, %cst_33 {dimension_numbers = #tpu.dot_dimension_numbers<[1], [0], [0], [1], [0, 0, 1, 1], [], []>} : vector<8x8xf32>, vector<8x16xf32>, vector<8x16xf32> -> vector<8x16xf32>
    %c0_34 = arith.constant 0 : index
    %c16_35 = arith.constant 16 : index
    %c0_36 = arith.constant 0 : index
    %57 = vector.load %arg7[%c0_34, %c16_35, %c0_36] : memref<1x32x32xf32, #tpu.memory_space<vmem>>, vector<1x16x32xf32>
    %58 = vector.shape_cast %57 : vector<1x16x32xf32> to vector<16x32xf32>
    %cst_37 = arith.constant dense<0.000000e+00> : vector<8x32xf32>
    %59 = tpu.matmul %56, %58, %cst_37 {dimension_numbers = #tpu.dot_dimension_numbers<[1], [0], [0], [1], [0, 0, 1, 1], [], []>} : vector<8x16xf32>, vector<16x32xf32>, vector<8x32xf32> -> vector<8x32xf32>
    %60 = arith.addf %39, %59 : vector<8x32xf32>
    %61 = vector.extract_strided_slice %3 {offsets = [0, 0], sizes = [8, 32], strides = [1, 1]} : vector<16x32xf32> to vector<8x32xf32>
    %c0_38 = arith.constant 0 : index
    %c0_39 = arith.constant 0 : index
    %c0_40 = arith.constant 0 : index
    %62 = vector.load %arg8[%c0_38, %c0_39, %c0_40] : memref<1x1x32xf32, #tpu.memory_space<vmem>>, vector<1x1x32xf32>
    %63 = vector.shape_cast %62 : vector<1x1x32xf32> to vector<1x32xf32>
    %64 = vector.broadcast %63 : vector<1x32xf32> to vector<8x32xf32>
    %65 = arith.addf %60, %64 : vector<8x32xf32>
    %66 = arith.addf %65, %61 : vector<8x32xf32>
    %c0_41 = arith.constant 0 : index
    %c0_42 = arith.constant 0 : index
    %c0_43 = arith.constant 0 : index
    %67 = vector.load %arg9[%c0_41, %c0_42, %c0_43] : memref<1x1x32xf32, #tpu.memory_space<vmem>>, vector<1x1x32xf32>
    %68 = vector.shape_cast %67 : vector<1x1x32xf32> to vector<1x32xf32>
    %c0_44 = arith.constant 0 : index
    %c0_45 = arith.constant 0 : index
    %c0_46 = arith.constant 0 : index
    %69 = vector.load %arg10[%c0_44, %c0_45, %c0_46] : memref<1x1x32xf32, #tpu.memory_space<vmem>>, vector<1x1x32xf32>
    %70 = vector.shape_cast %69 : vector<1x1x32xf32> to vector<1x32xf32>
    %cst_47 = arith.constant dense<0.000000e+00> : vector<8xf32>
    %71 = vector.multi_reduction <add>, %66, %cst_47 [1] : vector<8x32xf32> to vector<8xf32>
    %72 = vector.shape_cast %71 : vector<8xf32> to vector<8x1xf32>
    %cst_48 = arith.constant 3.200000e+01 : f32
    %73 = vector.broadcast %cst_48 : f32 to vector<8x1xf32>
    %74 = arith.divf %72, %73 : vector<8x1xf32>
    %75 = vector.broadcast %74 : vector<8x1xf32> to vector<8x32xf32>
    %76 = arith.subf %66, %75 : vector<8x32xf32>
    %77 = arith.mulf %76, %76 : vector<8x32xf32>
    %cst_49 = arith.constant dense<0.000000e+00> : vector<8xf32>
    %78 = vector.multi_reduction <add>, %77, %cst_49 [1] : vector<8x32xf32> to vector<8xf32>
    %79 = vector.shape_cast %78 : vector<8xf32> to vector<8x1xf32>
    %cst_50 = arith.constant 3.200000e+01 : f32
    %80 = vector.broadcast %cst_50 : f32 to vector<8x1xf32>
    %81 = arith.divf %79, %80 : vector<8x1xf32>
    %82 = vector.broadcast %74 : vector<8x1xf32> to vector<8x32xf32>
    %83 = arith.subf %66, %82 : vector<8x32xf32>
    %cst_51 = arith.constant 9.99999996E-13 : f32
    %84 = vector.broadcast %cst_51 : f32 to vector<8x1xf32>
    %85 = arith.addf %81, %84 : vector<8x1xf32>
    %86 = math.rsqrt %85 : vector<8x1xf32>
    %87 = vector.broadcast %86 : vector<8x1xf32> to vector<8x32xf32>
    %88 = arith.mulf %83, %87 : vector<8x32xf32>
    %89 = vector.broadcast %68 : vector<1x32xf32> to vector<8x32xf32>
    %90 = arith.mulf %88, %89 : vector<8x32xf32>
    %91 = vector.broadcast %70 : vector<1x32xf32> to vector<8x32xf32>
    %92 = arith.addf %90, %91 : vector<8x32xf32>
    %c0_52 = arith.constant 0 : index
    %c0_53 = arith.constant 0 : index
    %93 = vector.load %arg20[%c0_52, %c0_53] : memref<16x32xf32, #tpu.memory_space<vmem>>, vector<8x32xf32>
    tpu.vector_store %arg20[%c0_52, %c0_53], %92 {strides = array<i32>} : memref<16x32xf32, #tpu.memory_space<vmem>>, vector<8x32xf32>,
    %94 = vector.extract_strided_slice %16 {offsets = [1, 0], sizes = [1, 8], strides = [1, 1]} : vector<2x8xf32> to vector<1x8xf32>
    %cst_54 = arith.constant 0.000000e+00 : f32
    %95 = vector.broadcast %cst_54 : f32 to vector<8x32xf32>
    %c8 = arith.constant 8 : index
    %c0_55 = arith.constant 0 : index
    %96 = vector.load %arg19[%c8, %c0_55] : memref<16x96xf32, #tpu.memory_space<vmem>>, vector<8x16xf32>
    %c8_56 = arith.constant 8 : index
    %c32_57 = arith.constant 32 : index
    %97 = vector.load %arg19[%c8_56, %c32_57] : memref<16x96xf32, #tpu.memory_space<vmem>>, vector<8x16xf32>
    %c8_58 = arith.constant 8 : index
    %c64_59 = arith.constant 64 : index
    %98 = vector.load %arg19[%c8_58, %c64_59] : memref<16x96xf32, #tpu.memory_space<vmem>>, vector<8x16xf32>
    %cst_60 = arith.constant dense<0.000000e+00> : vector<8x8xf32>
    %99 = tpu.matmul %96, %97, %cst_60 {dimension_numbers = #tpu.dot_dimension_numbers<[1], [1], [0], [0], [0, 0, 1, 0], [], []>} : vector<8x16xf32>, vector<8x16xf32>, vector<8x8xf32> -> vector<8x8xf32>
    %100 = vector.broadcast %94 : vector<1x8xf32> to vector<8x8xf32>
    %101 = arith.addf %99, %100 : vector<8x8xf32>
    %cst_61 = arith.constant dense<0xFF800000> : vector<8xf32>
    %102 = vector.multi_reduction <maximumf>, %101, %cst_61 [1] : vector<8x8xf32> to vector<8xf32>
    %103 = vector.shape_cast %102 : vector<8xf32> to vector<8x1xf32>
    %104 = vector.broadcast %103 : vector<8x1xf32> to vector<8x8xf32>
    %105 = arith.subf %101, %104 : vector<8x8xf32>
    %106 = math.exp %105 : vector<8x8xf32>
    %cst_62 = arith.constant dense<0.000000e+00> : vector<8xf32>
    %107 = vector.multi_reduction <add>, %106, %cst_62 [1] : vector<8x8xf32> to vector<8xf32>
    %108 = vector.shape_cast %107 : vector<8xf32> to vector<8x1xf32>
    %109 = tpu.reciprocal %108 {approx = true} : vector<8x1xf32> -> vector<8x1xf32>
    %110 = vector.broadcast %109 : vector<8x1xf32> to vector<8x8xf32>
    %111 = arith.mulf %106, %110 : vector<8x8xf32>
    %cst_63 = arith.constant dense<0.000000e+00> : vector<8x16xf32>
    %112 = tpu.matmul %111, %98, %cst_63 {dimension_numbers = #tpu.dot_dimension_numbers<[1], [0], [0], [1], [0, 0, 1, 1], [], []>} : vector<8x8xf32>, vector<8x16xf32>, vector<8x16xf32> -> vector<8x16xf32>
    %c0_64 = arith.constant 0 : index
    %c0_65 = arith.constant 0 : index
    %c0_66 = arith.constant 0 : index
    %113 = vector.load %arg7[%c0_64, %c0_65, %c0_66] : memref<1x32x32xf32, #tpu.memory_space<vmem>>, vector<1x16x32xf32>
    %114 = vector.shape_cast %113 : vector<1x16x32xf32> to vector<16x32xf32>
    %cst_67 = arith.constant dense<0.000000e+00> : vector<8x32xf32>
    %115 = tpu.matmul %112, %114, %cst_67 {dimension_numbers = #tpu.dot_dimension_numbers<[1], [0], [0], [1], [0, 0, 1, 1], [], []>} : vector<8x16xf32>, vector<16x32xf32>, vector<8x32xf32> -> vector<8x32xf32>
    %116 = arith.addf %95, %115 : vector<8x32xf32>
    %c8_68 = arith.constant 8 : index
    %c16_69 = arith.constant 16 : index
    %117 = vector.load %arg19[%c8_68, %c16_69] : memref<16x96xf32, #tpu.memory_space<vmem>>, vector<8x16xf32>
    %c8_70 = arith.constant 8 : index
    %c48_71 = arith.constant 48 : index
    %118 = vector.load %arg19[%c8_70, %c48_71] : memref<16x96xf32, #tpu.memory_space<vmem>>, vector<8x16xf32>
    %c8_72 = arith.constant 8 : index
    %c80_73 = arith.constant 80 : index
    %119 = vector.load %arg19[%c8_72, %c80_73] : memref<16x96xf32, #tpu.memory_space<vmem>>, vector<8x16xf32>
    %cst_74 = arith.constant dense<0.000000e+00> : vector<8x8xf32>
    %120 = tpu.matmul %117, %118, %cst_74 {dimension_numbers = #tpu.dot_dimension_numbers<[1], [1], [0], [0], [0, 0, 1, 0], [], []>} : vector<8x16xf32>, vector<8x16xf32>, vector<8x8xf32> -> vector<8x8xf32>
    %121 = vector.broadcast %94 : vector<1x8xf32> to vector<8x8xf32>
    %122 = arith.addf %120, %121 : vector<8x8xf32>
    %cst_75 = arith.constant dense<0xFF800000> : vector<8xf32>
    %123 = vector.multi_reduction <maximumf>, %122, %cst_75 [1] : vector<8x8xf32> to vector<8xf32>
    %124 = vector.shape_cast %123 : vector<8xf32> to vector<8x1xf32>
    %125 = vector.broadcast %124 : vector<8x1xf32> to vector<8x8xf32>
    %126 = arith.subf %122, %125 : vector<8x8xf32>
    %127 = math.exp %126 : vector<8x8xf32>
    %cst_76 = arith.constant dense<0.000000e+00> : vector<8xf32>
    %128 = vector.multi_reduction <add>, %127, %cst_76 [1] : vector<8x8xf32> to vector<8xf32>
    %129 = vector.shape_cast %128 : vector<8xf32> to vector<8x1xf32>
    %130 = tpu.reciprocal %129 {approx = true} : vector<8x1xf32> -> vector<8x1xf32>
    %131 = vector.broadcast %130 : vector<8x1xf32> to vector<8x8xf32>
    %132 = arith.mulf %127, %131 : vector<8x8xf32>
    %cst_77 = arith.constant dense<0.000000e+00> : vector<8x16xf32>
    %133 = tpu.matmul %132, %119, %cst_77 {dimension_numbers = #tpu.dot_dimension_numbers<[1], [0], [0], [1], [0, 0, 1, 1], [], []>} : vector<8x8xf32>, vector<8x16xf32>, vector<8x16xf32> -> vector<8x16xf32>
    %c0_78 = arith.constant 0 : index
    %c16_79 = arith.constant 16 : index
    %c0_80 = arith.constant 0 : index
    %134 = vector.load %arg7[%c0_78, %c16_79, %c0_80] : memref<1x32x32xf32, #tpu.memory_space<vmem>>, vector<1x16x32xf32>
    %135 = vector.shape_cast %134 : vector<1x16x32xf32> to vector<16x32xf32>
    %cst_81 = arith.constant dense<0.000000e+00> : vector<8x32xf32>
    %136 = tpu.matmul %133, %135, %cst_81 {dimension_numbers = #tpu.dot_dimension_numbers<[1], [0], [0], [1], [0, 0, 1, 1], [], []>} : vector<8x16xf32>, vector<16x32xf32>, vector<8x32xf32> -> vector<8x32xf32>
    %137 = arith.addf %116, %136 : vector<8x32xf32>
    %138 = vector.extract_strided_slice %3 {offsets = [8, 0], sizes = [8, 32], strides = [1, 1]} : vector<16x32xf32> to vector<8x32xf32>
    %c0_82 = arith.constant 0 : index
    %c0_83 = arith.constant 0 : index
    %c0_84 = arith.constant 0 : index
    %139 = vector.load %arg8[%c0_82, %c0_83, %c0_84] : memref<1x1x32xf32, #tpu.memory_space<vmem>>, vector<1x1x32xf32>
    %140 = vector.shape_cast %139 : vector<1x1x32xf32> to vector<1x32xf32>
    %141 = vector.broadcast %140 : vector<1x32xf32> to vector<8x32xf32>
    %142 = arith.addf %137, %141 : vector<8x32xf32>
    %143 = arith.addf %142, %138 : vector<8x32xf32>
    %c0_85 = arith.constant 0 : index
    %c0_86 = arith.constant 0 : index
    %c0_87 = arith.constant 0 : index
    %144 = vector.load %arg9[%c0_85, %c0_86, %c0_87] : memref<1x1x32xf32, #tpu.memory_space<vmem>>, vector<1x1x32xf32>
    %145 = vector.shape_cast %144 : vector<1x1x32xf32> to vector<1x32xf32>
    %c0_88 = arith.constant 0 : index
    %c0_89 = arith.constant 0 : index
    %c0_90 = arith.constant 0 : index
    %146 = vector.load %arg10[%c0_88, %c0_89, %c0_90] : memref<1x1x32xf32, #tpu.memory_space<vmem>>, vector<1x1x32xf32>
    %147 = vector.shape_cast %146 : vector<1x1x32xf32> to vector<1x32xf32>
    %cst_91 = arith.constant dense<0.000000e+00> : vector<8xf32>
    %148 = vector.multi_reduction <add>, %143, %cst_91 [1] : vector<8x32xf32> to vector<8xf32>
    %149 = vector.shape_cast %148 : vector<8xf32> to vector<8x1xf32>
    %cst_92 = arith.constant 3.200000e+01 : f32
    %150 = vector.broadcast %cst_92 : f32 to vector<8x1xf32>
    %151 = arith.divf %149, %150 : vector<8x1xf32>
    %152 = vector.broadcast %151 : vector<8x1xf32> to vector<8x32xf32>
    %153 = arith.subf %143, %152 : vector<8x32xf32>
    %154 = arith.mulf %153, %153 : vector<8x32xf32>
    %cst_93 = arith.constant dense<0.000000e+00> : vector<8xf32>
    %155 = vector.multi_reduction <add>, %154, %cst_93 [1] : vector<8x32xf32> to vector<8xf32>
    %156 = vector.shape_cast %155 : vector<8xf32> to vector<8x1xf32>
    %cst_94 = arith.constant 3.200000e+01 : f32
    %157 = vector.broadcast %cst_94 : f32 to vector<8x1xf32>
    %158 = arith.divf %156, %157 : vector<8x1xf32>
    %159 = vector.broadcast %151 : vector<8x1xf32> to vector<8x32xf32>
    %160 = arith.subf %143, %159 : vector<8x32xf32>
    %cst_95 = arith.constant 9.99999996E-13 : f32
    %161 = vector.broadcast %cst_95 : f32 to vector<8x1xf32>
    %162 = arith.addf %158, %161 : vector<8x1xf32>
    %163 = math.rsqrt %162 : vector<8x1xf32>
    %164 = vector.broadcast %163 : vector<8x1xf32> to vector<8x32xf32>
    %165 = arith.mulf %160, %164 : vector<8x32xf32>
    %166 = vector.broadcast %145 : vector<1x32xf32> to vector<8x32xf32>
    %167 = arith.mulf %165, %166 : vector<8x32xf32>
    %168 = vector.broadcast %147 : vector<1x32xf32> to vector<8x32xf32>
    %169 = arith.addf %167, %168 : vector<8x32xf32>
    %c8_96 = arith.constant 8 : index
    %c0_97 = arith.constant 0 : index
    %170 = vector.load %arg20[%c8_96, %c0_97] : memref<16x32xf32, #tpu.memory_space<vmem>>, vector<8x32xf32>
    tpu.vector_store %arg20[%c8_96, %c0_97], %169 {strides = array<i32>} : memref<16x32xf32, #tpu.memory_space<vmem>>, vector<8x32xf32>,
    %c0_98 = arith.constant 0 : index
    %c0_99 = arith.constant 0 : index
    %171 = vector.load %arg20[%c0_98, %c0_99] : memref<16x32xf32, #tpu.memory_space<vmem>>, vector<16x32xf32>
    %c0_100 = arith.constant 0 : index
    %c0_101 = arith.constant 0 : index
    %c0_102 = arith.constant 0 : index
    %172 = vector.load %arg11[%c0_100, %c0_101, %c0_102] : memref<1x32x64xf32, #tpu.memory_space<vmem>>, vector<1x32x64xf32>
    %173 = vector.shape_cast %172 : vector<1x32x64xf32> to vector<32x64xf32>
    %cst_103 = arith.constant dense<0.000000e+00> : vector<16x64xf32>
    %174 = tpu.matmul %171, %173, %cst_103 {dimension_numbers = #tpu.dot_dimension_numbers<[1], [0], [0], [1], [0, 0, 1, 1], [], []>} : vector<16x32xf32>, vector<32x64xf32>, vector<16x64xf32> -> vector<16x64xf32>
    %c0_104 = arith.constant 0 : index
    %c0_105 = arith.constant 0 : index
    %c0_106 = arith.constant 0 : index
    %175 = vector.load %arg12[%c0_104, %c0_105, %c0_106] : memref<1x1x64xf32, #tpu.memory_space<vmem>>, vector<1x1x64xf32>
    %176 = vector.shape_cast %175 : vector<1x1x64xf32> to vector<1x64xf32>
    %177 = vector.broadcast %176 : vector<1x64xf32> to vector<16x64xf32>
    %178 = arith.addf %174, %177 : vector<16x64xf32>
    %cst_107 = arith.constant 5.000000e-01 : f32
    %179 = vector.broadcast %cst_107 : f32 to vector<16x64xf32>
    %180 = arith.mulf %179, %178 : vector<16x64xf32>
    %cst_108 = arith.constant 4.471500e-02 : f32
    %181 = vector.broadcast %cst_108 : f32 to vector<16x64xf32>
    %182 = arith.mulf %181, %178 : vector<16x64xf32>
    %183 = arith.mulf %182, %178 : vector<16x64xf32>
    %184 = arith.mulf %183, %178 : vector<16x64xf32>
    %185 = arith.addf %178, %184 : vector<16x64xf32>
    %cst_109 = arith.constant 0.797884583 : f32
    %186 = vector.broadcast %cst_109 : f32 to vector<16x64xf32>
    %187 = arith.mulf %186, %185 : vector<16x64xf32>
    %188 = math.tanh %187 : vector<16x64xf32>
    %cst_110 = arith.constant 1.000000e+00 : f32
    %189 = vector.broadcast %cst_110 : f32 to vector<16x64xf32>
    %190 = arith.addf %189, %188 : vector<16x64xf32>
    %191 = arith.mulf %180, %190 : vector<16x64xf32>
    %c0_111 = arith.constant 0 : index
    %c0_112 = arith.constant 0 : index
    %c0_113 = arith.constant 0 : index
    %192 = vector.load %arg13[%c0_111, %c0_112, %c0_113] : memref<1x64x32xf32, #tpu.memory_space<vmem>>, vector<1x64x32xf32>
    %193 = vector.shape_cast %192 : vector<1x64x32xf32> to vector<64x32xf32>
    %cst_114 = arith.constant dense<0.000000e+00> : vector<16x32xf32>
    %194 = tpu.matmul %191, %193, %cst_114 {dimension_numbers = #tpu.dot_dimension_numbers<[1], [0], [0], [1], [0, 0, 1, 1], [], []>} : vector<16x64xf32>, vector<64x32xf32>, vector<16x32xf32> -> vector<16x32xf32>
    %c0_115 = arith.constant 0 : index
    %c0_116 = arith.constant 0 : index
    %c0_117 = arith.constant 0 : index
    %195 = vector.load %arg14[%c0_115, %c0_116, %c0_117] : memref<1x1x32xf32, #tpu.memory_space<vmem>>, vector<1x1x32xf32>
    %196 = vector.shape_cast %195 : vector<1x1x32xf32> to vector<1x32xf32>
    %197 = vector.broadcast %196 : vector<1x32xf32> to vector<16x32xf32>
    %198 = arith.addf %194, %197 : vector<16x32xf32>
    %199 = arith.addf %198, %171 : vector<16x32xf32>
    %c0_118 = arith.constant 0 : index
    %c0_119 = arith.constant 0 : index
    %c0_120 = arith.constant 0 : index
    %200 = vector.load %arg15[%c0_118, %c0_119, %c0_120] : memref<1x1x32xf32, #tpu.memory_space<vmem>>, vector<1x1x32xf32>
    %201 = vector.shape_cast %200 : vector<1x1x32xf32> to vector<1x32xf32>
    %c0_121 = arith.constant 0 : index
    %c0_122 = arith.constant 0 : index
    %c0_123 = arith.constant 0 : index
    %202 = vector.load %arg16[%c0_121, %c0_122, %c0_123] : memref<1x1x32xf32, #tpu.memory_space<vmem>>, vector<1x1x32xf32>
    %203 = vector.shape_cast %202 : vector<1x1x32xf32> to vector<1x32xf32>
    %cst_124 = arith.constant dense<0.000000e+00> : vector<16xf32>
    %204 = vector.multi_reduction <add>, %199, %cst_124 [1] : vector<16x32xf32> to vector<16xf32>
    %205 = vector.shape_cast %204 : vector<16xf32> to vector<16x1xf32>
    %cst_125 = arith.constant 3.200000e+01 : f32
    %206 = vector.broadcast %cst_125 : f32 to vector<16x1xf32>
    %207 = arith.divf %205, %206 : vector<16x1xf32>
    %208 = vector.broadcast %207 : vector<16x1xf32> to vector<16x32xf32>
    %209 = arith.subf %199, %208 : vector<16x32xf32>
    %210 = arith.mulf %209, %209 : vector<16x32xf32>
    %cst_126 = arith.constant dense<0.000000e+00> : vector<16xf32>
    %211 = vector.multi_reduction <add>, %210, %cst_126 [1] : vector<16x32xf32> to vector<16xf32>
    %212 = vector.shape_cast %211 : vector<16xf32> to vector<16x1xf32>
    %cst_127 = arith.constant 3.200000e+01 : f32
    %213 = vector.broadcast %cst_127 : f32 to vector<16x1xf32>
    %214 = arith.divf %212, %213 : vector<16x1xf32>
    %215 = vector.broadcast %207 : vector<16x1xf32> to vector<16x32xf32>
    %216 = arith.subf %199, %215 : vector<16x32xf32>
    %cst_128 = arith.constant 9.99999996E-13 : f32
    %217 = vector.broadcast %cst_128 : f32 to vector<16x1xf32>
    %218 = arith.addf %214, %217 : vector<16x1xf32>
    %219 = math.rsqrt %218 : vector<16x1xf32>
    %220 = vector.broadcast %219 : vector<16x1xf32> to vector<16x32xf32>
    %221 = arith.mulf %216, %220 : vector<16x32xf32>
    %222 = vector.broadcast %201 : vector<1x32xf32> to vector<16x32xf32>
    %223 = arith.mulf %221, %222 : vector<16x32xf32>
    %224 = vector.broadcast %203 : vector<1x32xf32> to vector<16x32xf32>
    %225 = arith.addf %223, %224 : vector<16x32xf32>
    %c1_i32 = arith.constant 1 : i32
    %226 = arith.cmpi slt, %arg0, %c1_i32 : i32
    %227 = arith.extui %226 : i1 to i32
    %c0_i32_129 = arith.constant 0 : i32
    %228 = arith.cmpi ne, %227, %c0_i32_129 : i32
    scf.if %228 {
      %c0_132 = arith.constant 0 : index
      %c0_133 = arith.constant 0 : index
      %232 = vector.load %arg18[%c0_132, %c0_133] : memref<16x32xf32, #tpu.memory_space<vmem>>, vector<16x32xf32>
      tpu.vector_store %arg18[%c0_132, %c0_133], %225 {strides = array<i32>} : memref<16x32xf32, #tpu.memory_space<vmem>>, vector<16x32xf32>,
    } else {
    }
    %c1_i32_130 = arith.constant 1 : i32
    %229 = arith.cmpi eq, %arg0, %c1_i32_130 : i32
    %230 = arith.extui %229 : i1 to i32
    %c0_i32_131 = arith.constant 0 : i32
    %231 = arith.cmpi ne, %230, %c0_i32_131 : i32
    scf.if %231 {
      %c0_132 = arith.constant 0 : index
      %c0_133 = arith.constant 0 : index
      %232 = vector.load %arg17[%c0_132, %c0_133] : memref<16x32xf32, #tpu.memory_space<vmem>>, vector<16x32xf32>
      tpu.vector_store %arg17[%c0_132, %c0_133], %225 {strides = array<i32>} : memref<16x32xf32, #tpu.memory_space<vmem>>, vector<16x32xf32>,
    } else {
    }
    return
  }
  func.func @transform_0(%arg0: i32) -> (i32, i32) {
    %c0_i32 = arith.constant 0 : i32
    %c0_i32_0 = arith.constant 0 : i32
    %c0_i32_1 = arith.constant 0 : i32
    return %c0_i32, %c0_i32_0 : i32, i32
  }
  func.func @transform_1(%arg0: i32) -> (i32, i32) {
    %c0_i32 = arith.constant 0 : i32
    %c0_i32_0 = arith.constant 0 : i32
    %c0_i32_1 = arith.constant 0 : i32
    return %c0_i32, %c0_i32_0 : i32, i32
  }
  func.func @transform_2(%arg0: i32) -> (i32, i32) {
    %c0_i32 = arith.constant 0 : i32
    %c0_i32_0 = arith.constant 0 : i32
    %c0_i32_1 = arith.constant 0 : i32
    return %c0_i32, %c0_i32_0 : i32, i32
  }
  func.func @transform_3(%arg0: i32) -> (i32, i32) {
    %c0_i32 = arith.constant 0 : i32
    %c0_i32_0 = arith.constant 0 : i32
    %c0_i32_1 = arith.constant 0 : i32
    return %c0_i32, %c0_i32_0 : i32, i32
  }
  func.func @transform_4(%arg0: i32) -> (i32, i32, i32) {
    %c0_i32 = arith.constant 0 : i32
    %c0_i32_0 = arith.constant 0 : i32
    %c0_i32_1 = arith.constant 0 : i32
    return %arg0, %c0_i32, %c0_i32_0 : i32, i32, i32
  }
  func.func @transform_5(%arg0: i32) -> (i32, i32, i32) {
    %c0_i32 = arith.constant 0 : i32
    %c0_i32_0 = arith.constant 0 : i32
    %c0_i32_1 = arith.constant 0 : i32
    return %arg0, %c0_i32, %c0_i32_0 : i32, i32, i32
  }
  func.func @transform_6(%arg0: i32) -> (i32, i32, i32) {
    %c0_i32 = arith.constant 0 : i32
    %c0_i32_0 = arith.constant 0 : i32
    %c0_i32_1 = arith.constant 0 : i32
    return %arg0, %c0_i32, %c0_i32_0 : i32, i32, i32
  }
  func.func @transform_7(%arg0: i32) -> (i32, i32, i32) {
    %c0_i32 = arith.constant 0 : i32
    %c0_i32_0 = arith.constant 0 : i32
    %c0_i32_1 = arith.constant 0 : i32
    return %arg0, %c0_i32, %c0_i32_0 : i32, i32, i32
  }
  func.func @transform_8(%arg0: i32) -> (i32, i32, i32) {
    %c0_i32 = arith.constant 0 : i32
    %c0_i32_0 = arith.constant 0 : i32
    %c0_i32_1 = arith.constant 0 : i32
    return %arg0, %c0_i32, %c0_i32_0 : i32, i32, i32
  }
  func.func @transform_9(%arg0: i32) -> (i32, i32, i32) {
    %c0_i32 = arith.constant 0 : i32
    %c0_i32_0 = arith.constant 0 : i32
    %c0_i32_1 = arith.constant 0 : i32
    return %arg0, %c0_i32, %c0_i32_0 : i32, i32, i32
  }
  func.func @transform_10(%arg0: i32) -> (i32, i32, i32) {
    %c0_i32 = arith.constant 0 : i32
    %c0_i32_0 = arith.constant 0 : i32
    %c0_i32_1 = arith.constant 0 : i32
    return %arg0, %c0_i32, %c0_i32_0 : i32, i32, i32
  }
  func.func @transform_11(%arg0: i32) -> (i32, i32, i32) {
    %c0_i32 = arith.constant 0 : i32
    %c0_i32_0 = arith.constant 0 : i32
    %c0_i32_1 = arith.constant 0 : i32
    return %arg0, %c0_i32, %c0_i32_0 : i32, i32, i32
  }
  func.func @transform_12(%arg0: i32) -> (i32, i32, i32) {
    %c0_i32 = arith.constant 0 : i32
    %c0_i32_0 = arith.constant 0 : i32
    %c0_i32_1 = arith.constant 0 : i32
    return %arg0, %c0_i32, %c0_i32_0 : i32, i32, i32
  }
  func.func @transform_13(%arg0: i32) -> (i32, i32, i32) {
    %c0_i32 = arith.constant 0 : i32
    %c0_i32_0 = arith.constant 0 : i32
    %c0_i32_1 = arith.constant 0 : i32
    return %arg0, %c0_i32, %c0_i32_0 : i32, i32, i32
  }
  func.func @transform_14(%arg0: i32) -> (i32, i32, i32) {
    %c0_i32 = arith.constant 0 : i32
    %c0_i32_0 = arith.constant 0 : i32
    %c0_i32_1 = arith.constant 0 : i32
    return %arg0, %c0_i32, %c0_i32_0 : i32, i32, i32
  }
  func.func @transform_15(%arg0: i32) -> (i32, i32, i32) {
    %c0_i32 = arith.constant 0 : i32
    %c0_i32_0 = arith.constant 0 : i32
    %c0_i32_1 = arith.constant 0 : i32
    return %arg0, %c0_i32, %c0_i32_0 : i32, i32, i32
  }
  func.func @transform_16(%arg0: i32) -> (i32, i32) {
    %c0_i32 = arith.constant 0 : i32
    %c0_i32_0 = arith.constant 0 : i32
    %c0_i32_1 = arith.constant 0 : i32
    return %c0_i32, %c0_i32_0 : i32, i32
  }
}

</mosaic_0001>

<bundles_post_ra>
// kernel: _lambda_.1
= control target key start
LH: loop header
LB: loop body
LE: loop exit
PB: predicated region body
PF: predicated region fallthrough
CT: control target
= control target key end

     0   :  { %s3061_s0 = inlined_call_operand.vmem [shape: f32[16,32], index: 0, kind: input, shape index: {}]   ;;  %s3062_s1 = inlined_call_operand.vmem [shape: f32[2,8], index: 1, kind: input, shape index: {}]   ;;  %s3063_s2 = inlined_call_operand.vmem [shape: f32[1,32], index: 2, kind: input, shape index: {}]   ;;  %s3064_s3 = inlined_call_operand.vmem [shape: f32[1,32], index: 3, kind: input, shape index: {}]   ;;  %s3065_s4 = inlined_call_operand.vmem [shape: f32[2,32,96], index: 4, kind: input, shape index: {}]   ;;  %s3066_s5 = inlined_call_operand.vmem [shape: f32[2,1,96], index: 5, kind: input, shape index: {}]   ;;  %s3067_s6 = inlined_call_operand.vmem [shape: f32[2,32,32], index: 6, kind: input, shape index: {}]   ;;  %s3068_s7 = inlined_call_operand.vmem [shape: f32[2,1,32], index: 7, kind: input, shape index: {}, may-alias: {7,9,13,15}]   ;;  %s3069_s8 = inlined_call_operand.vmem [shape: f32[2,1,32], index: 8, kind: input, shape index: {}, may-alias: {8,14}]   ;;  %s3070_s9 = inlined_call_operand.vmem [shape: f32[2,1,32], index: 9, kind: input, shape index: {}, may-alias: {7,9,13,15}]   ;;  %s3071_s10 = inlined_call_operand.vmem [shape: f32[2,32,64], index: 10, kind: input, shape index: {}]   ;;  %s3072_s11 = inlined_call_operand.vmem [shape: f32[2,1,64], index: 11, kind: input, shape index: {}]   ;;  %s3073_s12 = inlined_call_operand.vmem [shape: f32[2,64,32], index: 12, kind: input, shape index: {}]   ;;  %s3074_s13 = inlined_call_operand.vmem [shape: f32[2,1,32], index: 13, kind: input, shape index: {}, may-alias: {7,9,13,15}]   ;;  %s3075_s14 = inlined_call_operand.vmem [shape: f32[2,1,32], index: 14, kind: input, shape index: {}, may-alias: {8,14}]   ;;  %s3076_s15 = inlined_call_operand.vmem [shape: f32[2,1,32], index: 15, kind: input, shape index: {}, may-alias: {7,9,13,15}]   ;;  %s3077_s16 = inlined_call_operand.hbm [shape: f32[16,32], index: 16, kind: output, shape index: {}]  }
   0x1   :  { %3082 = sst [smem:[#allocation10_spill]] %s3061_s0 }
   0x2   :  { %3083 = sst [smem:[#allocation11_spill]] %s3062_s1 }
   0x3   :  { %3084 = sst [smem:[#allocation12_spill]] %s3064_s3 }
   0x4   :  { %3085 = sst [smem:[#allocation13_spill]] %s3065_s4 }
   0x5   :  { %3086 = sst [smem:[#allocation14_spill]] %s3067_s6 }
   0x6   :  { %3087 = sst [smem:[#allocation15_spill]] %s3077_s16 }
   0x7   :  { %21 = vsyncpa [#allocation6], 0  ;;  %s2759_s21 = smov 0  }
   0x8 LB: > { %3088 = sst [smem:[#allocation8_spill]] %s2661_s21  ;;  %s2765_s22 = sadd.s32 4294967295, %s2661_s21   ;;  %s2661_s21 = sphi %s2759_s21, %s27_s21  }
   0x9   : > { %p2310_p0 = scmp.ge.s32.totalorder %s2661_s21, 1  ;;  %p552_p1 = scmp.lt.s32.totalorder %s2661_s21, 3 }
   0xb   : > { %p553_p2 = pnand %p2310_p0, %p552_p1 }
   0xd   : > { %556 = sbr.rel (%p553_p2) target bundleno = 3544 (0xdd8), region = 84 }
  0x14   : > { %p636_p3 = scmp.lt.s32.totalorder %s2765_s22, 1  ;;  %s3089_s4 = sld [smem:[#allocation13_spill]] }
  0x15   : > { %s3090_s6 = sld [smem:[#allocation14_spill]]  ;;  %p2319_p4 = scmp.ne.s32.totalorder %s2765_s22, 0 }
  0x16   : > { %s2771_s23 = scalar_select %p636_p3, %s2765_s22, 1 }
  0x17   : > { %683 = sbr.rel (%p2319_p4) target bundleno = 348 (0x15c), region = 88  ;;  %s3092_s19 = sld [smem:[#allocation10_spill]] (!%p2319_p4)  ;;  %vm688_vm0 = vcmask (!%p2319_p4), 261120   ;;  %v2320_v21 = vld [vmem:[%s3063_s2] ss:$0 sm:$0xff] (!%p2319_p4) }
  0x18   : > { %s2361_s24 = sshll.u32 %s2771_s23, 5  ;;  %s673_s25 = scalar_lea.vmem %s3074_s13, %s2771_s23 }
  0x19   : > { %s676_s28 = scalar_lea.vmem %s3075_s14, %s2771_s23  ;;  %s679_s3 = scalar_lea.vmem %s3076_s15, %s2771_s23 }
  0x1a   : > { %s2781_s30 = scalar_lea.vmem %s3089_s4, %s2361_s24  ;;  %s2803_s4 = scalar_lea.vmem %s3071_s10, %s2361_s24 }
  0x1b   : > { %s2786_s18 = scalar_lea.vmem %s3090_s6, %s2361_s24  ;;  %s665_s6 = scalar_lea.vmem %s3072_s11, %s2771_s23 }
  0x1c   : > { %3091 = sst [smem:[#allocation9_spill]] %s2786_s18  ;;  %s2364_s18 = sshll.u32 %s2771_s23, 6 }
  0x1d   : > { %s2813_s21 = scalar_lea.vmem %s3073_s12, %s2364_s18  ;;  %v684_v0 = vld [vmem:[%s3092_s19] sm:$0xff] (!%p2319_p4)  ;;  %v685_v1 = vld [vmem:[%s3092_s19 + $0x8] sm:$0xff] (!%p2319_p4)  ;;  %s3093_s24 = sld [smem:[#allocation12_spill]] (!%p2319_p4) }
  0x1e   : > { %v689_v2 = vsel %vm688_vm0, %v684_v0, 0.0  ;;  %v692_v3 = vsel %vm688_vm0, %v685_v1, 0.0 }
  0x1f   : > { %690 = vadd.xlane.f32.xlu0 %v689_v2 }
  0x23   : > { %693 = vadd.xlane.f32.xlu0 %v692_v3  ;;  %v2321_v23 = vld [vmem:[%s3093_s24] ss:$0 sm:$0xff] }
  0xac   : > { %v691_v4 = vpop.xlane.xlu0 %690 }
  0xad   : > { %v696_v5 = vmul.f32 0.03125, %v691_v4 }
  0xaf   : > { %v698_v6 = vsub.f32 %v684_v0, %v696_v5 }
  0xb0   : > { %v694_v7 = vpop.xlane.xlu0 %693 }
  0xb1   : > { %v697_v8 = vmul.f32 0.03125, %v694_v7  ;;  %v700_v9 = vmul.f32 %v698_v6, %v698_v6 }
  0xb3   : > { %v699_v10 = vsub.f32 %v685_v1, %v697_v8  ;;  %v702_v11 = vsel %vm688_vm0, %v700_v9, 0.0 }
  0xb4   : > { %703 = vadd.xlane.f32.xlu1 %v702_v11 }
  0xb5   : > { %v701_v12 = vmul.f32 %v699_v10, %v699_v10 }
  0xb7   : > { %v705_v13 = vsel %vm688_vm0, %v701_v12, 0.0 }
  0xb8   : > { %706 = vadd.xlane.f32.xlu1 %v705_v13 }
 0x141   : > { %v704_v14 = vpop.xlane.xlu1 %703 }
 0x142   : > { %v708_v15 = vmul.f32 0.03125, %v704_v14 }
 0x144   : > { %v710_v16 = vadd.f32 1e-12, %v708_v15 }
 0x145   : > { %v707_v17 = vpop.xlane.xlu1 %706 }
 0x146   : > { %2593 = vrsqrt.f32 %v710_v16  ;;  %v709_v18 = vmul.f32 0.03125, %v707_v17 }
 0x148   : > { %v711_v19 = vadd.f32 1e-12, %v709_v18 }
 0x14a   : > { %2595 = vrsqrt.f32 %v711_v19 }
 0x150   : > { %v2594_v20 = vpop.eup %2593 }
 0x151   : > { %v714_v22 = vmul.f32 %v2594_v20, %v698_v6 }
 0x153   : > { %v722_v24 = vmul.f32 %v2320_v21, %v714_v22 }
 0x154   : > { %v2596_v25 = vpop.eup %2595 }
 0x155   : > { %v730_v26 = vadd.f32 %v2321_v23, %v722_v24  ;;  %v715_v27 = vmul.f32 %v2596_v25, %v699_v10 }
 0x157   : > { %732 = vst.msk [vmem:[#allocation2] sm:$0xff] %vm688_vm0, %v730_v26  ;;  %v723_v28 = vmul.f32 %v2320_v21, %v715_v27 }
 0x159   : > { %v731_v29 = vadd.f32 %v2321_v23, %v723_v28 }
 0x15b   : > { %733 = vst.msk [vmem:[#allocation2 + $0x8] sm:$0xff] %vm688_vm0, %v731_v29 }
 0x15c PF: > { %v736_v30 = vld [vmem:[%s2781_s30] sm:$0xff]  ;;  %v737_v31 = vld [vmem:[%s2781_s30 + $0x8] sm:$0xff]  ;;  %v738_v32 = vld [vmem:[%s2781_s30 + $0x10] sm:$0xff]  ;;  %vm747_vm1 = vcmask 261120   ;;  %v2663_v38 = vmov 0.0   ;;  %s3094_s0 = scalar_lea.vmem %s3066_s5, %s2771_s23  ;;  %vm829_vm2 = vcmask 785408   ;;  %v836_v48 = vlaneseq  ;;  %s3098_s27 = scalar_lea.vmem %s3069_s8, %s2771_s23 }
 0x15d   : > { %v2524_v33 = vpack.c.bf16 %v737_v31, %v736_v30  ;;  %v739_v34 = vld [vmem:[%s2781_s30 + $0x18] sm:$0xff]  ;;  %2431 = vmatprep.subr.mxu1 %v2663_v38  ;;  %v2322_v39 = vld [vmem:[%s3094_s0] ss:$0 sm:$0xff]  ;;  %vm2664_vm3 = vmmov 0   ;;  %s2665_s17 = smov 112   ;;  %s2666_s18 = smov 96  }
 0x15e   : > { %v2850_v35 = vld [vmem:[#allocation2] sm:$0xff]  ;;  %v2528_v36 = vpack.c.bf16 %v739_v34, %v738_v32  ;;  %2433 = vmatprep.mubr.msk.f32.mxu1 %vm2664_vm3, %v2663_v38  ;;  %s2667_s20 = smov 80   ;;  %vm843_vm4 = vcmask 130048   ;;  %s3095_s16 = sld [smem:[#allocation11_spill]]  ;;  %v2884_v51 = vshrl.u32 %v836_v48, 7  ;;  %vm918_vm5 = vcmask 64512  }
 0x15f   : > { %2423 = vmatprep.mubr.msk.f32.mxu0 %vm747_vm1, %v2850_v35  ;;  %2525 = vmatprep.subr.bf16.mxu0 %v2524_v33  ;;  %s3096_s26 = sld [smem:[#allocation9_spill]]  ;;  %s2668_s24 = smov 48   ;;  %v2670_v12 = vmov 0.0|0.0   ;;  %vm2011_vm6 = vcmask 523264  }
 0x160   : > { %2527 = vmatpush3.bf16.msra.mxu0 %v2524_v33  ;;  %v838_v53 = vsub.s32 0, %v2884_v51  ;;  %s2669_s30 = smov 64   ;;  %v1364_v34 = vsub.s32 1, %v2884_v51  ;;  %p2355_p5 = scmp.ge.s32.totalorder %s2765_s22, 1 }
 0x161   : > { %2529 = vmatprep.subr.bf16.mxu0 %v2528_v36 }
 0x162   : > { %v2854_v37 = vld [vmem:[#allocation2 + $0x8] sm:$0xff] }
 0x164   : > { %2531 = vmatpush3.bf16.msra.mxu0 %v2528_v36  ;;  %v832_v49 = vld [vmem:[%s3095_s16] sm:$0x3] }
 0x165   : > { %2426 = vmatprep.subr.mxu0 %v2663_v38  ;;  %v833_v50 = vsub.f32 1.0, %v832_v49  ;;  %v1173_v10 = vld [vmem:[%s3096_s26 + $0x10] sm:$0xff]  ;;  %v1174_v11 = vld [vmem:[%s3096_s26 + $0x18] sm:$0xff]  ;;  %v1006_v19 = vld [vmem:[%s3096_s26] sm:$0xff] }
 0x166   : > { %v2533_v13 = vpack.c.bf16 %v1174_v11, %v1173_v10  ;;  %v1007_v20 = vld [vmem:[%s3096_s26 + $0x8] sm:$0xff]  ;;  %s3099_s26 = scalar_lea.vmem %s3070_s9, %s2771_s23 }
 0x167   : > { %2424 = vmatmul.mubr.msk.f32.vlgmr.msra.gmra.mrb[0].mxu0 %vm747_vm1, %v2854_v37  ;;  %v2886_v52 = vmul.f32 -10000.0, %v833_v50  ;;  %v2914_v23 = vpack.c.bf16 %v1007_v20, %v1006_v19 }
 0x168   : > { %2428 = vmatprep.mubr.msk.f32.mxu0 %vm2664_vm3, %v2663_v38 }
 0x169   : > { %v839_v54 = vrot.slane %v2886_v52, %v838_v53 }
 0x23a   : > { %v2425_v40 = vpop.f32.mrb[0].mxu0 }
 0x23b   : > { %v826_v41 = vadd.f32 %v2425_v40, %v2322_v39  ;;  %v820_v42 = vpop.f32.mrb[1].mxu0 }
 0x23c   : > { %v821_v43 = vadd.f32 %v2322_v39, %v820_v42 }
 0x23d   : > { %831 = vst.msk [vmem:[#allocation3 + $0x8] sm:$0xff] %vm829_vm2, %v826_v41  ;;  %v1365_v41 = vrot.slane %v2886_v52, %v1364_v34 }
 0x23e   : > { %830 = vst.msk [vmem:[#allocation3] sm:$0xff] %vm829_vm2, %v821_v43 }
 0x244   : > { %v2896_v9 = vld [vmem:[#allocation3 + $0x8] sm:$0xff] }
 0x245   : > { %v835_v44 = vld [vmem:[#allocation3] sm:$0xff] }
 0x246   : > { %1008 = vrot.lane.b32.xlu1 %v835_v44, %s2665_s17  ;;  %841 = vrot.lane.b32.xlu0 %v835_v44, %s2666_s18 }
 0x24a   : > { %1010 = vrot.lane.b32.xlu0 %v835_v44, %s2667_s20 }
 0x2b8   : > { %v842_v45 = vpop.permute.xlu0 %841  ;;  %v1009_v47 = vpop.permute.xlu1 %1008 }
 0x2b9   : > { %2427 = vmatpush3.xpose.msk.msra.mxu0 %vm843_vm4, %v842_v45 }
 0x2ba   : > { %2436 = vmatprep.subr.mxu0 %v2663_v38 }
 0x2bc   : > { %2429 = vmatmul.mubr.msk.f32.vlgmr.msra.gmra.mrb[2].mxu0 %vm843_vm4, %v835_v44  ;;  %v1011_v46 = vpop.permute.xlu0 %1010 }
 0x2bd   : > { %2437 = vmatpush3.xpose.msk.msra.mxu0 %vm843_vm4, %v1011_v46  ;;  %2438 = vmatprep.mubr.msk.f32.mxu0 %vm2664_vm3, %v2663_v38 }
 0x2be   : > { %2532 = vmatprep.subr.bf16.mxu0 %v2670_v12 }
 0x2c0   : > { %2439 = vmatmul.mubr.msk.f32.vlgmr.msra.gmra.mrb[4].mxu0 %vm843_vm4, %v1009_v47 }
 0x2c1   : > { %2450 = vmatprep.mubr.msk.f32.mxu0 %vm2664_vm3, %v2663_v38  ;;  %2534 = vmatpush3.bf16.msra.mxu0 %v2533_v13 }
 0x2c2   : > { %2460 = vmatprep.subr.mxu0 %v2663_v38 }
 0x38f   : > { %v914_v55 = vpop.f32.mrb[2].mxu0 }
 0x390   : > { %v915_v56 = vadd.f32 %v914_v55, %v839_v54  ;;  %v2430_v57 = vpop.f32.mrb[3].mxu0 }
 0x392   : > { %v919_v58 = vsel %vm918_vm5, %v915_v56, -inf }
 0x393   : > { %920 = vmax.xlane.f32.xlu1 %v919_v58  ;;  %v1082_v59 = vpop.f32.mrb[4].mxu0 }
 0x394   : > { %v1083_v60 = vadd.f32 %v1082_v59, %v839_v54  ;;  %v2440_v61 = vpop.f32.mrb[5].mxu0 }
 0x396   : > { %v1086_v62 = vsel %vm918_vm5, %v1083_v60, -inf }
 0x397   : > { %1087 = vmax.xlane.f32.xlu0 %v1086_v62 }
 0x420   : > { %v921_v63 = vpop.xlane.xlu1 %920 }
 0x421   : > { %v922_v0 = vsub.f32 %v915_v56, %v921_v63 }
 0x423   : > { %v923_v1 = vmul.f32 1.442695, %v922_v0 }
 0x424   : > { %v1088_v2 = vpop.xlane.xlu0 %1087 }
 0x425   : > { %2597 = vpow2.f32 %v923_v1  ;;  %v1089_v3 = vsub.f32 %v1083_v60, %v1088_v2 }
 0x427   : > { %v1090_v4 = vmul.f32 1.442695, %v1089_v3 }
 0x429   : > { %2599 = vpow2.f32 %v1090_v4 }
 0x42f   : > { %v2598_v5 = vpop.eup %2597 }
 0x430   : > { %v925_v6 = vsel %vm918_vm5, %v2598_v5, 0.0 }
 0x431   : > { %926 = vadd.xlane.f32.xlu0 %v925_v6 }
 0x433   : > { %v2600_v7 = vpop.eup %2599 }
 0x434   : > { %v1092_v8 = vsel %vm918_vm5, %v2600_v7, 0.0 }
 0x435   : > { %1093 = vadd.xlane.f32.xlu1 %v1092_v8 }
 0x446   : > { %1097 = vrot.lane.b32.xlu1 %v835_v44, %s2668_s24 }
 0x447   : > { %930 = vrot.lane.b32.xlu0 %v835_v44, %s2669_s30 }
 0x44a   : > { %1367 = vrot.lane.b32.xlu1 %v2896_v9, %s2666_s18 }
 0x44b   : > { %1534 = vrot.lane.b32.xlu0 %v2896_v9, %s2667_s20 }
 0x44e   : > { %1532 = vrot.lane.b32.xlu1 %v2896_v9, %s2665_s17  ;;  %s3097_s17 = scalar_lea.vmem %s3068_s7, %s2771_s23 }
 0x44f   : > { %v2950_v50 = vld [vmem:[%s3097_s17] ss:$0 sm:$0xff] }
 0x4be   : > { %v927_v14 = vpop.xlane.xlu0 %926 }
 0x4bf   : > { %2601 = vrcp.f32 %v927_v14 }
 0x4c2   : > { %v1094_v15 = vpop.xlane.xlu1 %1093  ;;  %v931_v16 = vpop.permute.xlu0 %930 }
 0x4c3   : > { %2603 = vrcp.f32 %v1094_v15  ;;  %2432 = vmatpush3.msra.mxu1 %v931_v16 }
 0x4c4   : > { %2441 = vmatprep.subr.mxu1 %v2663_v38 }
 0x4c6   : > { %v1098_v21 = vpop.permute.xlu1 %1097  ;;  %v1535_v30 = vpop.permute.xlu0 %1534 }
 0x4c9   : > { %v2602_v17 = vpop.eup %2601 }
 0x4ca   : > { %v929_v18 = vmul.f32 %v2602_v17, %v2598_v5  ;;  %v1368_v28 = vpop.permute.xlu1 %1367  ;;  %v2334_v17 = vld [vmem:[%s3098_s27] ss:$0 sm:$0xff] }
 0x4cc   : > { %2434 = vmatmul.mubr.msk.f32.vlgmr.msra.gmra.mrb[0].mxu1 %vm918_vm5, %v929_v18 }
 0x4cd   : > { %v2604_v22 = vpop.eup %2603  ;;  %2442 = vmatpush3.msra.mxu1 %v1098_v21  ;;  %2443 = vmatprep.mubr.msk.f32.mxu1 %vm2664_vm3, %v2663_v38 }
 0x4ce   : > { %v1096_v24 = vmul.f32 %v2604_v22, %v2600_v7  ;;  %2535 = vmatprep.subr.bf16.mxu1 %v2670_v12  ;;  %v1533_v31 = vpop.permute.xlu1 %1532 }
 0x4d0   : > { %2444 = vmatmul.mubr.msk.f32.vlgmr.msra.gmra.mrb[2].mxu1 %vm918_vm5, %v1096_v24 }
 0x4d1   : > { %2537 = vmatpush3.bf16.msra.mxu1 %v2914_v23  ;;  %2457 = vmatprep.mubr.msk.f32.mxu1 %vm2664_vm3, %v2663_v38 }
 0x4d2   : > { %2465 = vmatprep.subr.mxu1 %v2663_v38 }
 0x59f   : > { %v1002_v25 = vpop.f32.mrb[0].mxu1 }
 0x5a0   : > { %v2435_v26 = vpop.f32.mrb[1].mxu1  ;;  %2458 = vmatmul.mubr.msk.f32.vlgmr.msra.gmra.mrb[4].mxu1 %vm843_vm4, %v1002_v25 }
 0x5a1   : > { %2467 = vmatprep.mubr.msk.f32.mxu1 %vm2664_vm3, %v2663_v38 }
 0x5a3   : > { %v1169_v27 = vpop.f32.mrb[2].mxu1 }
 0x5a4   : > { %v2445_v29 = vpop.f32.mrb[3].mxu1  ;;  %2451 = vmatmul.mubr.msk.f32.vlgmr.msra.gmra.mrb[6].mxu0 %vm843_vm4, %v1169_v27 }
 0x5a5   : > { %2461 = vmatpush3.xpose.msk.msra.mxu0 %vm843_vm4, %v1368_v28  ;;  %2462 = vmatprep.mubr.msk.f32.mxu0 %vm2664_vm3, %v2663_v38 }
 0x5a6   : > { %2470 = vmatprep.subr.mxu0 %v2663_v38 }
 0x5a8   : > { %2463 = vmatmul.mubr.msk.f32.vlgmr.msra.gmra.mrb[8].mxu0 %vm843_vm4, %v2896_v9 }
 0x5a9   : > { %2471 = vmatpush3.xpose.msk.msra.mxu0 %vm843_vm4, %v1535_v30  ;;  %2472 = vmatprep.mubr.msk.f32.mxu0 %vm2664_vm3, %v2663_v38 }
 0x5aa   : > { %2538 = vmatprep.subr.bf16.mxu0 %v2670_v12 }
 0x5ac   : > { %2473 = vmatmul.mubr.msk.f32.vlgmr.msra.gmra.mrb[10].mxu0 %vm843_vm4, %v1533_v31 }
 0x5ad   : > { %2540 = vmatpush3.bf16.msra.mxu0 %v2533_v13  ;;  %2484 = vmatprep.mubr.msk.f32.mxu0 %vm2664_vm3, %v2663_v38 }
 0x673   : > { %v1317_v32 = vpop.f32.mrb[4].mxu1 }
 0x674   : > { %v2459_v33 = vpop.f32.mrb[5].mxu1 }
 0x677   : > { %v1244_v36 = vpop.f32.mrb[6].mxu0 }
 0x678   : > { %v1318_v39 = vadd.f32 %v1317_v32, %v1244_v36  ;;  %v2452_v40 = vpop.f32.mrb[7].mxu0 }
 0x67a   : > { %v1328_v51 = vadd.f32 %v2950_v50, %v1318_v39 }
 0x67b   : > { %v1439_v42 = vpop.f32.mrb[8].mxu0 }
 0x67c   : > { %v1440_v43 = vadd.f32 %v1439_v42, %v1365_v41  ;;  %v2464_v44 = vpop.f32.mrb[9].mxu0  ;;  %v1329_v52 = vadd.f32 %v1328_v51, %v2850_v35  ;;  %v1887_v42 = vld [vmem:[%s2803_s4 + $0x8] sm:$0xff] }
 0x67d   : > { %v1888_v44 = vld [vmem:[%s2803_s4 + $0x10] sm:$0xff] }
 0x67e   : > { %v1443_v45 = vsel %vm918_vm5, %v1440_v43, -inf  ;;  %v1332_v53 = vsel %vm747_vm1, %v1329_v52, 0.0 }
 0x67f   : > { %1444 = vmax.xlane.f32.xlu0 %v1443_v45  ;;  %v1606_v46 = vpop.f32.mrb[10].mxu0  ;;  %v1889_v45 = vld [vmem:[%s2803_s4 + $0x18] sm:$0xff] }
 0x680   : > { %v1607_v47 = vadd.f32 %v1606_v46, %v1365_v41  ;;  %v2474_v48 = vpop.f32.mrb[11].mxu0  ;;  %v1886_v41 = vld [vmem:[%s2803_s4] sm:$0xff]  ;;  %v2548_v46 = vpack.c.bf16 %v1889_v45, %v1888_v44 }
 0x682   : > { %v1610_v49 = vsel %vm918_vm5, %v1607_v47, -inf }
 0x683   : > { %1611 = vmax.xlane.f32.xlu1 %v1610_v49 }
 0x694   : > { %1454 = vrot.lane.b32.xlu1 %v2896_v9, %s2669_s30 }
 0x6b8   : > { %1333 = vadd.xlane.f32.xlu1 %v1332_v53 }
 0x70c   : > { %v1445_v54 = vpop.xlane.xlu0 %1444 }
 0x70d   : > { %v1446_v55 = vsub.f32 %v1440_v43, %v1445_v54  ;;  %v2544_v43 = vpack.c.bf16 %v1887_v42, %v1886_v41  ;;  %v1996_v54 = vld [vmem:[%s2813_s21] sm:$0xff] }
 0x70f   : > { %v1447_v56 = vmul.f32 1.442695, %v1446_v55  ;;  %2545 = vmatprep.subr.bf16.mxu0 %v2544_v43  ;;  %v1997_v55 = vld [vmem:[%s2813_s21 + $0x8] sm:$0xff] }
 0x710   : > { %v1612_v57 = vpop.xlane.xlu1 %1611 }
 0x711   : > { %2605 = vpow2.f32 %v1447_v56  ;;  %v1613_v58 = vsub.f32 %v1607_v47, %v1612_v57  ;;  %v2552_v56 = vpack.c.bf16 %v1997_v55, %v1996_v54  ;;  %v1998_v57 = vld [vmem:[%s2813_s21 + $0x10] sm:$0xff]  ;;  %v2354_v54 = vld [vmem:[%s679_s3] ss:$0 sm:$0xff] }
 0x713   : > { %v1614_v59 = vmul.f32 1.442695, %v1613_v58  ;;  %v1999_v58 = vld [vmem:[%s2813_s21 + $0x18] sm:$0xff] }
 0x714   : > { %v1455_v60 = vpop.permute.xlu1 %1454 }
 0x715   : > { %2607 = vpow2.f32 %v1614_v59  ;;  %2466 = vmatpush3.msra.mxu1 %v1455_v60  ;;  %v2556_v59 = vpack.c.bf16 %v1999_v58, %v1998_v57  ;;  %v2000_v60 = vld [vmem:[%s2813_s21 + $0x20] sm:$0xff] }
 0x716   : > { %2475 = vmatprep.subr.mxu1 %v2663_v38 }
 0x71b   : > { %v2606_v61 = vpop.eup %2605 }
 0x71c   : > { %v1449_v62 = vsel %vm918_vm5, %v2606_v61, 0.0 }
 0x71d   : > { %1450 = vadd.xlane.f32.xlu0 %v1449_v62 }
 0x71f   : > { %v2608_v35 = vpop.eup %2607 }
 0x720   : > { %v1616_v63 = vsel %vm918_vm5, %v2608_v35, 0.0 }
 0x721   : > { %1617 = vadd.xlane.f32.xlu0 %v1616_v63  ;;  %v2003_v63 = vld [vmem:[%s2813_s21 + $0x38] sm:$0xff] }
 0x737   : > { %1621 = vrot.lane.b32.xlu0 %v2896_v9, %s2668_s24 }
 0x745   : > { %v1334_v0 = vpop.xlane.xlu1 %1333 }
 0x746   : > { %v1336_v1 = vmul.f32 0.03125, %v1334_v0 }
 0x748   : > { %v1337_v2 = vsub.f32 %v1329_v52, %v1336_v1  ;;  %v2347_v1 = vld [vmem:[%s665_s6] ss:$0 sm:$0xff] }
 0x74a   : > { %v1338_v3 = vmul.f32 %v1337_v2, %v1337_v2 }
 0x74c   : > { %v1339_v4 = vsel %vm747_vm1, %v1338_v3, 0.0 }
 0x74d   : > { %1340 = vadd.xlane.f32.xlu1 %v1339_v4 }
 0x7aa   : > { %v1451_v5 = vpop.xlane.xlu0 %1450 }
 0x7ab   : > { %2609 = vrcp.f32 %v1451_v5 }
 0x7ae   : > { %v1618_v6 = vpop.xlane.xlu0 %1617 }
 0x7af   : > { %2611 = vrcp.f32 %v1618_v6 }
 0x7b2   : > { %v1622_v10 = vpop.permute.xlu0 %1621 }
 0x7b5   : > { %v2610_v7 = vpop.eup %2609 }
 0x7b6   : > { %v1453_v8 = vmul.f32 %v2610_v7, %v2606_v61  ;;  %v2001_v61 = vld [vmem:[%s2813_s21 + $0x28] sm:$0xff] }
 0x7b7   : > { %v2560_v62 = vpack.c.bf16 %v2001_v61, %v2000_v60 }
 0x7b8   : > { %2468 = vmatmul.mubr.msk.f32.vlgmr.msra.gmra.mrb[6].mxu1 %vm918_vm5, %v1453_v8 }
 0x7b9   : > { %v2612_v11 = vpop.eup %2611  ;;  %2476 = vmatpush3.msra.mxu1 %v1622_v10  ;;  %2477 = vmatprep.mubr.msk.f32.mxu1 %vm2664_vm3, %v2663_v38 }
 0x7ba   : > { %v1620_v9 = vmul.f32 %v2612_v11, %v2608_v35  ;;  %2541 = vmatprep.subr.bf16.mxu1 %v2670_v12  ;;  %v2335_v12 = vld [vmem:[%s3099_s26] ss:$0 sm:$0xff]  ;;  %v2002_v35 = vld [vmem:[%s2813_s21 + $0x30] sm:$0xff] }
 0x7bb   : > { %v2564_v0 = vpack.c.bf16 %v2003_v63, %v2002_v35 }
 0x7bc   : > { %2478 = vmatmul.mubr.msk.f32.vlgmr.msra.gmra.mrb[8].mxu1 %vm918_vm5, %v1620_v9 }
 0x7bd   : > { %2543 = vmatpush3.bf16.msra.mxu1 %v2914_v23  ;;  %2491 = vmatprep.mubr.msk.f32.mxu1 %vm2664_vm3, %v2663_v38 }
 0x7be   : > { %2553 = vmatprep.subr.bf16.mxu1 %v2552_v56 }
 0x7da   : > { %v1341_v13 = vpop.xlane.xlu1 %1340 }
 0x7db   : > { %v1342_v14 = vmul.f32 0.03125, %v1341_v13 }
 0x7dd   : > { %v1343_v15 = vadd.f32 1e-12, %v1342_v14 }
 0x7df   : > { %2613 = vrsqrt.f32 %v1343_v15 }
 0x7e9   : > { %v2614_v16 = vpop.eup %2613 }
 0x7ea   : > { %v1345_v18 = vmul.f32 %v2614_v16, %v1337_v2 }
 0x7ec   : > { %v1352_v19 = vmul.f32 %v2334_v17, %v1345_v18 }
 0x7ee   : > { %v1359_v20 = vadd.f32 %v2335_v12, %v1352_v19 }
 0x7f0   : > { %1360 = vst.msk [vmem:[#allocation4] sm:$0xff] %vm747_vm1, %v1359_v20 }
 0x7f7   : > { %v2982_v24 = vld [vmem:[#allocation4] sm:$0xff] }
 0x88b   : > { %v1526_v38 = vpop.f32.mrb[6].mxu1 }
 0x88c   : > { %v2469_v21 = vpop.f32.mrb[7].mxu1  ;;  %2492 = vmatmul.mubr.msk.f32.vlgmr.msra.gmra.mrb[10].mxu1 %vm843_vm4, %v1526_v38 }
 0x88d   : > { %2555 = vmatpush3.bf16.msra.mxu1 %v2552_v56 }
 0x88e   : > { %2557 = vmatprep.subr.bf16.mxu1 %v2556_v59 }
 0x88f   : > { %v1693_v22 = vpop.f32.mrb[8].mxu1 }
 0x890   : > { %v2479_v23 = vpop.f32.mrb[9].mxu1  ;;  %2485 = vmatmul.mubr.msk.f32.vlgmr.msra.gmra.mrb[12].mxu0 %vm843_vm4, %v1693_v22 }
 0x891   : > { %2502 = vmatprep.mubr.msk.f32.mxu0 %vm747_vm1, %v2982_v24  ;;  %2547 = vmatpush3.bf16.msra.mxu0 %v2544_v43  ;;  %v2350_v23 = vld [vmem:[%s673_s25] ss:$0 sm:$0xff] }
 0x892   : > { %2549 = vmatprep.subr.bf16.mxu0 %v2548_v46  ;;  %2559 = vmatpush3.bf16.msra.mxu1 %v2556_v59 }
 0x893   : > { %2561 = vmatprep.subr.bf16.mxu1 %v2560_v62 }
 0x895   : > { %2551 = vmatpush3.bf16.msra.mxu0 %v2548_v46 }
 0x896   : > { %2563 = vmatpush3.bf16.msra.mxu1 %v2560_v62 }
 0x897   : > { %2565 = vmatprep.subr.bf16.mxu1 %v2564_v0 }
 0x89a   : > { %2567 = vmatpush3.bf16.msra.mxu1 %v2564_v0 }
 0x95f   : > { %v1841_v25 = vpop.f32.mrb[10].mxu1 }
 0x960   : > { %v2493_v26 = vpop.f32.mrb[11].mxu1 }
 0x963   : > { %v1768_v27 = vpop.f32.mrb[12].mxu0 }
 0x964   : > { %v1842_v28 = vadd.f32 %v1841_v25, %v1768_v27  ;;  %v2486_v29 = vpop.f32.mrb[13].mxu0 }
 0x966   : > { %v1852_v30 = vadd.f32 %v2950_v50, %v1842_v28 }
 0x968   : > { %v1853_v31 = vadd.f32 %v1852_v30, %v2854_v37 }
 0x96a   : > { %v1856_v32 = vsel %vm747_vm1, %v1853_v31, 0.0 }
 0x96b   : > { %1857 = vadd.xlane.f32.xlu0 %v1856_v32 }
 0x9f8   : > { %v1858_v33 = vpop.xlane.xlu0 %1857 }
 0x9f9   : > { %v1859_v34 = vmul.f32 0.03125, %v1858_v33 }
 0x9fb   : > { %v1860_v36 = vsub.f32 %v1853_v31, %v1859_v34 }
 0x9fd   : > { %v1861_v39 = vmul.f32 %v1860_v36, %v1860_v36 }
 0x9ff   : > { %v1862_v40 = vsel %vm747_vm1, %v1861_v39, 0.0 }
 0xa00   : > { %1863 = vadd.xlane.f32.xlu0 %v1862_v40 }
 0xa8d   : > { %v1864_v37 = vpop.xlane.xlu0 %1863 }
 0xa8e   : > { %v1865_v47 = vmul.f32 0.03125, %v1864_v37 }
 0xa90   : > { %v1866_v48 = vadd.f32 1e-12, %v1865_v47 }
 0xa92   : > { %2615 = vrsqrt.f32 %v1866_v48 }
 0xa9c   : > { %v2616_v49 = vpop.eup %2615 }
 0xa9d   : > { %v1868_v50 = vmul.f32 %v2616_v49, %v1860_v36 }
 0xa9f   : > { %v1875_v51 = vmul.f32 %v2334_v17, %v1868_v50 }
 0xaa1   : > { %v1882_v52 = vadd.f32 %v2335_v12, %v1875_v51  ;;  %v2353_v51 = vld [vmem:[%s676_s28] ss:$0 sm:$0xff] }
 0xaa3   : > { %1883 = vst.msk [vmem:[#allocation4 + $0x8] sm:$0xff] %vm747_vm1, %v1882_v52 }
 0xaaa   : > { %v1885_v53 = vld [vmem:[#allocation4 + $0x8] sm:$0xff] }
 0xaab   : > { %2503 = vmatmul.mubr.msk.f32.vlgmr.msra.gmra.mrb[14].mxu0 %vm747_vm1, %v1885_v53 }
 0xb7e   : > { %v2504_v2 = vpop.f32.mrb[14].mxu0 }
 0xb7f   : > { %v1975_v3 = vadd.f32 %v2504_v2, %v2347_v1  ;;  %v1969_v4 = vpop.f32.mrb[15].mxu0 }
 0xb80   : > { %v1970_v5 = vadd.f32 %v2347_v1, %v1969_v4 }
 0xb81   : > { %v1981_v6 = vmul.f32 0.044715, %v1975_v3  ;;  %v1979_v38 = vmul.f32 0.5, %v1975_v3 }
 0xb82   : > { %v1980_v7 = vmul.f32 0.044715, %v1970_v5  ;;  %v1978_v19 = vmul.f32 0.5, %v1970_v5 }
 0xb83   : > { %v1983_v8 = vmul.f32 %v1981_v6, %v1975_v3 }
 0xb84   : > { %v1982_v10 = vmul.f32 %v1980_v7, %v1970_v5 }
 0xb85   : > { %v1985_v11 = vmul.f32 %v1983_v8, %v1975_v3 }
 0xb86   : > { %v1984_v9 = vmul.f32 %v1982_v10, %v1970_v5 }
 0xb87   : > { %v1987_v13 = vadd.f32 %v1985_v11, %v1975_v3 }
 0xb88   : > { %v1986_v14 = vadd.f32 %v1984_v9, %v1970_v5 }
 0xb89   : > { %v1989_v15 = vmul.f32 0.7978846, %v1987_v13 }
 0xb8a   : > { %v1988_v16 = vmul.f32 0.7978846, %v1986_v14 }
 0xb8b   : > { %2617 = vtanh.f32 %v1989_v15 }
 0xb8c   : > { %2619 = vtanh.f32 %v1988_v16 }
 0xb95   : > { %v2618_v17 = vpop.eup %2617 }
 0xb96   : > { %v2620_v18 = vpop.eup %2619  ;;  %v1993_v12 = vadd.f32 1.0, %v2618_v17 }
 0xb97   : > { %v1992_v20 = vadd.f32 1.0, %v2620_v18 }
 0xb98   : > { %v1995_v22 = vmul.f32 %v1993_v12, %v1979_v38 }
 0xb99   : > { %v1994_v21 = vmul.f32 %v1992_v20, %v1978_v19 }
 0xb9b   : > { %2521 = vmatprep.mubr.msk.f32.mxu1 %vm2011_vm6, %v1994_v21 }
 0xb9c   : > { %2522 = vmatmul.mubr.msk.f32.vlgmr.msra.gmra.mrb[12].mxu1 %vm2011_vm6, %v1995_v22 }
 0xc6f   : > { %v2523_v25 = vpop.f32.mrb[12].mxu1 }
 0xc70   : > { %v2090_v26 = vadd.f32 %v2523_v25, %v2350_v23  ;;  %v2084_v27 = vpop.f32.mrb[13].mxu1 }
 0xc71   : > { %v2085_v28 = vadd.f32 %v2350_v23, %v2084_v27 }
 0xc72   : > { %v2094_v29 = vadd.f32 %v2090_v26, %v1885_v53 }
 0xc73   : > { %v2093_v30 = vadd.f32 %v2085_v28, %v2982_v24 }
 0xc74   : > { %v2100_v31 = vsel %vm747_vm1, %v2094_v29, 0.0 }
 0xc75   : > { %2101 = vadd.xlane.f32.xlu0 %v2100_v31  ;;  %v2097_v32 = vsel %vm747_vm1, %v2093_v30, 0.0 }
 0xc76   : > { %2098 = vadd.xlane.f32.xlu1 %v2097_v32 }
 0xd02   : > { %v2102_v33 = vpop.xlane.xlu0 %2101 }
 0xd03   : > { %v2104_v34 = vmul.f32 0.03125, %v2102_v33  ;;  %v2099_v36 = vpop.xlane.xlu1 %2098 }
 0xd04   : > { %v2103_v39 = vmul.f32 0.03125, %v2099_v36 }
 0xd05   : > { %v2106_v40 = vsub.f32 %v2094_v29, %v2104_v34 }
 0xd06   : > { %v2105_v41 = vsub.f32 %v2093_v30, %v2103_v39 }
 0xd07   : > { %v2108_v42 = vmul.f32 %v2106_v40, %v2106_v40 }
 0xd08   : > { %v2107_v43 = vmul.f32 %v2105_v41, %v2105_v41 }
 0xd09   : > { %v2112_v44 = vsel %vm747_vm1, %v2108_v42, 0.0 }
 0xd0a   : > { %2113 = vadd.xlane.f32.xlu0 %v2112_v44  ;;  %v2109_v24 = vsel %vm747_vm1, %v2107_v43, 0.0 }
 0xd0b   : > { %2110 = vadd.xlane.f32.xlu1 %v2109_v24 }
 0xd97   : > { %v2114_v45 = vpop.xlane.xlu0 %2113 }
 0xd98   : > { %v2116_v46 = vmul.f32 0.03125, %v2114_v45  ;;  %v2111_v37 = vpop.xlane.xlu1 %2110 }
 0xd99   : > { %v2115_v47 = vmul.f32 0.03125, %v2111_v37 }
 0xd9a   : > { %v2118_v48 = vadd.f32 1e-12, %v2116_v46 }
 0xd9b   : > { %v2117_v49 = vadd.f32 1e-12, %v2115_v47 }
 0xd9c   : > { %2621 = vrsqrt.f32 %v2118_v48 }
 0xd9d   : > { %2623 = vrsqrt.f32 %v2117_v49 }
 0xda6   : > { %v2622_v50 = vpop.eup %2621  ;;  %2142 = sbr.rel (%p2355_p5) target bundleno = 3503 (0xdaf), region = 92 }
 0xda7   : > { %v2624_v52 = vpop.eup %2623  ;;  %v2122_v53 = vmul.f32 %v2622_v50, %v2106_v40 }
 0xda8   : > { %v2121_v55 = vmul.f32 %v2624_v52, %v2105_v41 }
 0xda9   : > { %v2130_v56 = vmul.f32 %v2353_v51, %v2122_v53 }
 0xdaa   : > { %v2129_v57 = vmul.f32 %v2353_v51, %v2121_v55 }
 0xdab   : > { %v2138_v58 = vadd.f32 %v2354_v54, %v2130_v56 }
 0xdac   : > { %v2137_v59 = vadd.f32 %v2354_v54, %v2129_v57 }
 0xdad   : > { %2144 = vst.msk [vmem:[#allocation2 + $0x8] sm:$0xff] %vm747_vm1, %v2138_v58 }
 0xdae   : > { %2143 = vst.msk [vmem:[#allocation2] sm:$0xff] %vm747_vm1, %v2137_v59 }
 0xdaf PF: > { %p2356_p6 = scmp.ne.s32.totalorder %s2765_s22, 1 }
 0xdb0   : > { %2149 = vst.msk [vmem:[#allocation5] sm:$0xff] (!%p2356_p6), %vm747_vm1, %v2137_v59  ;;  %2150 = vst.msk [vmem:[#allocation5 + $0x8] sm:$0xff] (!%p2356_p6), %vm747_vm1, %v2138_v58 }
 0xdb1   : > { %2148 = sbr.rel (%p2356_p6) target bundleno = 3512 (0xdb8), region = 96 }
 0xdb8 PF: > { %p2572_p7 = scmp.eq.s32.totalorder %s2765_s22, 1  ;;  %s2671_s3 = smov [#allocation5]  }
 0xdb9   : > { %s2157_s23 = sshll.u32 %s2671_s3, 4  ;;  %s2158_s23 = int_to_ptr.vmem [resolvable:$true] %s2157_s23 }
 0xdba   : > { %s2625_s28 = scalar_lea.vmem %s2158_s23, 256  ;;  %p2632_p11 = scmp.lt.s32.totalorder %s2158_s23, %s2158_s23 }
 0xdbb   : > { %p2626_p8 = scmp.ne.s32.totalorder %s2158_s23, %s2625_s28  ;;  %p2633_p12 = scmp.lt.s32.totalorder %s2625_s28, %s2625_s28 }
 0xdbd   : > { %p2627_p9 = pnand %p2626_p8, %p2572_p7  ;;  %p2634_p13 = por %p2633_p12, %p2632_p11 }
 0xdbf   : > { %p2628_p10 = pneg %p2627_p9 }
 0xdc1   : > { %p2635_p0 = pnand %p2634_p13, %p2628_p10 }
 0xdc3   : > { %2638 = shalt.err (!%p2635_p0)
}
 0xdc4   : > { %s3100_s20 = sld [smem:[#allocation15_spill]] }
 0xdca   : > { %s2639_s27 = scalar_lea.hbm %s3100_s20, 256 }
 0xdcb   : > { %p2640_p1 = scmp.ne.s32.totalorder %s3100_s20, %s2639_s27  ;;  %p2645_p4 = scmp.lt.u32.totalorder %s2639_s27, %s3100_s20 }
 0xdcd   : > { %p2641_p2 = pnand %p2640_p1, %p2572_p7 }
 0xdcf   : > { %p2642_p3 = pneg %p2641_p2 }
 0xdd1   : > { %p2647_p5 = pnand %p2645_p4, %p2642_p3 }
 0xdd3   : > { %2650 = shalt.err (!%p2647_p5)
}
 0xdd4   : > { %s2672_s24 = smov 128   ;;  %s2673_s6 = smov 8  }
 0xdd5   : > { %2569 = dma.vmem_to_hbm [thread:$0]  (%p2572_p7), %s2158_s23, 256, %s3100_s20, [#allocation6], %s2672_s24, %s2672_s24, %s2673_s6  }
 0xdd6   : > { %2656 = dma.done.wait (%p2572_p7), [#allocation6], 256  }
 0xdd7   : > { %2658 = vsyncadd (%p2572_p7), [#allocation6], 4294967040 }
 0xdd8 PF: > { %s3101_s30 = sld [smem:[#allocation8_spill]] }
 0xdde   : > { %s27_s21 = sadd.s32 1, %s3101_s30  }
 0xddf   : > { %p24_p6 = scmp.ge.s32.totalorder %s27_s21, 4  }
 0xde1   :  { %26 = sbr.rel (!%p24_p6) target bundleno = 8 (0x8), region = 156 }
 0xde8   :  { %2173 = vsyncpa [#allocation6], 1 }
 0xde9   :  { %2175 = vsyncpa [#allocation6 + $0x1], 1 }

</bundles_post_ra>
